<compile_context>
chip_gen: v7x
topology: tpu7x:2x2x1
jax: 0.10.0
libtpu: 0.0.40
codegen_flags: <defaults>
</compile_context>

<pallas_src>
import jax
import jax.numpy as jnp
from jax import lax
from jax.experimental import pallas as pl
from jax.experimental.pallas import tpu as pltpu  # noqa: F401  (kept for TPU-specific tuning hooks)

# ----------------------------- small config -----------------------------
VOCAB = 64        # vocab_size
CTX = 8           # context_length (== T)
EMB = 32          # embedding_size
NUM_HEADS = 4
HEAD = EMB // NUM_HEADS
NUM_BLOCKS = 2
BATCH = 2
EPS = 1e-5        # nn.LayerNorm default eps
LANE = 128        # TPU lane width; small vectors / logits padded to this
N_ROWS = BATCH * CTX          # flattened (B*T) rows, one 2-D slab
W_COLS = NUM_HEADS * N_ROWS   # head-concatenated key columns for attention


def _ln(x):
    # Affine-free LayerNorm; the (w, b) affine is folded into downstream weights.
    mu = jnp.mean(x, axis=-1, keepdims=True)
    var = jnp.mean((x - mu) ** 2, axis=-1, keepdims=True)
    return (x - mu) * lax.rsqrt(var + EPS)


# --------------------------- fused forward kernel ---------------------------
def gpt_kernel(tok_ref,                                   # (B*T, 1) int32 token ids
               wte_ref, pos_ref,                          # (V,E), (B*T,E) positional slab
               wq_ref, wk_ref, wv_ref, wo_ref,            # (NB,E,E) each (LN1/scale folded)
               w1_ref, w2_ref,                            # (NB,E,4E) (LN2 folded), (NB,4E,E)
               vecs_ref,                                   # (NB,8,128) packed bias rows
               headw_ref, headb_ref,                       # (E,128), (1,128) (LNf folded)
               addmask_ref, headsel_ref, segsum_ref,       # (16,64), (64,32), (64,64)
               o_ref):                                     # (B*T, 128) padded logits
    # ---- token + positional embedding: one-hot MXU matmul (no serial gather) ----
    vocab_iota = lax.broadcasted_iota(jnp.int32, (N_ROWS, VOCAB), 1)
    onehot = (tok_ref[...] == vocab_iota).astype(jnp.float32)            # (16, 64)
    x = jnp.dot(onehot, wte_ref[...], preferred_element_type=jnp.float32) + pos_ref[...]

    addmask = addmask_ref[...]        # additive mask: 0 allowed, -1e30 masked
    head_sel = headsel_ref[...]       # (64, 32) per-head column selector
    seg_sum = segsum_ref[...]         # (64, 64) per-head segment summation

    for nb in range(NUM_BLOCKS):
        vb = vecs_ref[nb]                                  # (8, 128) packed bias rows
        bq, bk, bv = vb[0:1, :EMB], vb[1:2, :EMB], vb[2:3, :EMB]
        bo, b1, b2 = vb[3:4, :EMB], vb[4:5, :], vb[5:6, :EMB]

        # ---- attention: LN1(folded) -> Q/K/V -> head-blocked causal attention -> proj ----
        hn = _ln(x)
        q = jnp.dot(hn, wq_ref[nb], preferred_element_type=jnp.float32) + bq   # scale folded
        k = jnp.dot(hn, wk_ref[nb], preferred_element_type=jnp.float32) + bk
        v = jnp.dot(hn, wv_ref[nb], preferred_element_type=jnp.float32) + bv

        # Concatenate K/V once per head along rows, zero off-head columns; one
        # (16,32)x(64,32)^T matmul then yields all per-head score blocks side by side.
        k_cat = jnp.concatenate([k] * NUM_HEADS, axis=0) * head_sel            # (64, 32)
        v_cat = jnp.concatenate([v] * NUM_HEADS, axis=0) * head_sel            # (64, 32)

        s = lax.dot_general(q, k_cat, (((1,), (1,)), ((), ())),
                            preferred_element_type=jnp.float32) + addmask      # (16, 64)
        s = s - jnp.max(s, axis=-1, keepdims=True)
        p = jnp.exp(s)                                     # masked entries underflow to 0
        denom = jnp.dot(p, seg_sum, preferred_element_type=jnp.float32)        # per-head sums
        denom = jnp.maximum(denom, 1e-30)                  # guard approx reciprocal
        p = p * pl.reciprocal(denom, approx=True)          # EUP, off the VALU
        att = jnp.dot(p, v_cat, preferred_element_type=jnp.float32)            # (16, 32)
        x = x + jnp.dot(att, wo_ref[nb], preferred_element_type=jnp.float32) + bo

        # ---- MLP: LN2(folded) -> Linear(E,4E) -> ReLU -> Linear(4E,E) ----
        hn2 = _ln(x)
        ff = jnp.dot(hn2, w1_ref[nb], preferred_element_type=jnp.float32) + b1  # (16, 128)
        ff = jnp.maximum(ff, 0.0)
        x = x + jnp.dot(ff, w2_ref[nb], preferred_element_type=jnp.float32) + b2

    # ---- final LayerNorm(folded) + lm_head (vocab padded to 128 lanes -> dense store) ----
    hf = _ln(x)
    o_ref[...] = jnp.dot(hf, headw_ref[...], preferred_element_type=jnp.float32) + headb_ref[...]


# ------------------------------- wrapper -------------------------------
def _full_spec(shape):
    zeros = (0,) * len(shape)
    return pl.BlockSpec(shape, lambda i, z=zeros: z)


def gpt_forward(tokens, packed):
    B, T = tokens.shape
    n = B * T
    tok_col = tokens.reshape(n, 1).astype(jnp.int32)
    args = (tok_col, packed["wte"], packed["pos"],
            packed["wq"], packed["wk"], packed["wv"], packed["wo"],
            packed["w1"], packed["w2"], packed["vecs"],
            packed["head_w"], packed["head_b"],
            packed["addmask"], packed["head_sel"], packed["seg_sum"])
    out = pl.pallas_call(
        gpt_kernel,
        out_shape=jax.ShapeDtypeStruct((n, LANE), jnp.float32),
        grid_spec=pl.GridSpec(
            grid=(1,),
            in_specs=[_full_spec(a.shape) for a in args],
            out_specs=pl.BlockSpec((n, LANE), lambda i: (0, 0)),
        ),
    )(*args)
    return out[:, :VOCAB].reshape(B, T, VOCAB)


# --------------------------- parameter packing ---------------------------
def pack_params(params):
    def pad_lane(v):                      # (1, m) -> (1, 128)
        return jnp.pad(v, ((0, 0), (0, LANE - v.shape[-1])))

    scale = HEAD ** -0.5
    wq_l, wk_l, wv_l, wo_l, w1_l, w2_l, vecs_l = [], [], [], [], [], [], []
    for (ln1w, ln1b, Wq, Wk, Wv, Wo, bo, ln2w, ln2b, W1, b1, W2, b2) in params["blocks"]:
        # Fold LN1 affine + attention scale into Q/K/V weights and bias rows.
        wq_l.append(ln1w.reshape(EMB, 1) * Wq * scale)
        wk_l.append(ln1w.reshape(EMB, 1) * Wk)
        wv_l.append(ln1w.reshape(EMB, 1) * Wv)
        wo_l.append(Wo)
        # Fold LN2 affine into FFN-up weight and bias.
        w1_l.append(ln2w.reshape(EMB, 1) * W1)
        w2_l.append(W2)
        bq = (ln1b @ Wq) * scale
        bk = ln1b @ Wk
        bv = ln1b @ Wv
        b1f = ln2b @ W1 + b1                                  # (1, 4E) == (1, 128)
        vecs_l.append(jnp.concatenate(
            [pad_lane(bq), pad_lane(bk), pad_lane(bv), pad_lane(bo),
             b1f, pad_lane(b2), jnp.zeros((2, LANE), jnp.float32)], axis=0))   # (8, 128)

    # Fold final LayerNorm affine into lm_head.
    head_w = jnp.pad(params["lnf_w"].reshape(EMB, 1) * params["head_w"],
                     ((0, 0), (0, LANE - VOCAB)))                              # (E, 128)
    head_b = jnp.pad(params["lnf_b"] @ params["head_w"] + params["head_b"],
                     ((0, 0), (0, LANE - VOCAB)))                              # (1, 128)

    # Positional slab: wpe tiled over batch so row i gets position i % CTX.
    pos = jnp.tile(params["wpe"], (BATCH, 1))                                   # (B*T, E)

    # Attention constants (shared by all blocks), built host-side.
    row = jnp.arange(N_ROWS)[:, None]
    col = jnp.arange(W_COLS)[None, :]
    key = col % N_ROWS
    allowed = ((row // CTX) == (key // CTX)) & ((key % CTX) <= (row % CTX))
    addmask = jnp.where(allowed, 0.0, -1e30).astype(jnp.float32)               # (16, 64)

    r_i = jnp.arange(W_COLS)[:, None]
    e_i = jnp.arange(EMB)[None, :]
    head_sel = ((r_i // N_ROWS) == (e_i // HEAD)).astype(jnp.float32)          # (64, 32)

    a_i = jnp.arange(W_COLS)[:, None]
    b_i = jnp.arange(W_COLS)[None, :]
    seg_sum = ((a_i // N_ROWS) == (b_i // N_ROWS)).astype(jnp.float32)         # (64, 64)

    return dict(wte=params["wte"], pos=pos,
                wq=jnp.stack(wq_l), wk=jnp.stack(wk_l), wv=jnp.stack(wv_l),
                wo=jnp.stack(wo_l), w1=jnp.stack(w1_l), w2=jnp.stack(w2_l),
                vecs=jnp.stack(vecs_l), head_w=head_w, head_b=head_b,
                addmask=addmask, head_sel=head_sel, seg_sum=seg_sum)


# --------------------------- pure-JAX reference ---------------------------
def _ref_ln(x, w, b):
    mu = jnp.mean(x, axis=-1, keepdims=True)
    var = jnp.mean((x - mu) ** 2, axis=-1, keepdims=True)
    return (x - mu) / jnp.sqrt(var + EPS) * w + b


def gpt_reference(tokens, params):
    B, T = tokens.shape
    x = params["wte"][tokens] + params["wpe"][jnp.arange(T)][None]
    causal = jnp.tril(jnp.ones((T, T), bool))
    for (ln1w, ln1b, wq, wk, wv, wo, bo, ln2w, ln2b, w1, b1, w2, b2) in params["blocks"]:
        h = _ref_ln(x, ln1w, ln1b)
        q, k, v = h @ wq, h @ wk, h @ wv
        q = q.reshape(B, T, NUM_HEADS, HEAD).transpose(0, 2, 1, 3)
        k = k.reshape(B, T, NUM_HEADS, HEAD).transpose(0, 2, 1, 3)
        v = v.reshape(B, T, NUM_HEADS, HEAD).transpose(0, 2, 1, 3)
        sc = jnp.einsum("bhqd,bhkd->bhqk", q, k) * (HEAD ** -0.5)
        sc = jnp.where(causal[None, None], sc, -jnp.inf)
        p = jax.nn.softmax(sc, axis=-1)
        att = jnp.einsum("bhqk,bhkd->bhqd", p, v).transpose(0, 2, 1, 3).reshape(B, T, EMB)
        x = x + att @ wo + bo
        h2 = _ref_ln(x, ln2w, ln2b)
        x = x + jnp.maximum(h2 @ w1 + b1, 0.0) @ w2 + b2
    x = _ref_ln(x, params["lnf_w"], params["lnf_b"])
    return x @ params["head_w"] + params["head_b"]


# ------------------------------ param init ------------------------------
def init_params(key):
    def normal(key, shape):
        return 0.02 * jax.random.normal(key, shape, jnp.float32)

    keys = iter(jax.random.split(key, 8 + NUM_BLOCKS * 8))
    params = {
        "wte": normal(next(keys), (VOCAB, EMB)),
        "wpe": normal(next(keys), (CTX, EMB)),
        "lnf_w": jnp.ones((1, EMB), jnp.float32),
        "lnf_b": jnp.zeros((1, EMB), jnp.float32),
        "head_w": normal(next(keys), (EMB, VOCAB)),
        "head_b": jnp.zeros((1, VOCAB), jnp.float32),
        "blocks": [],
    }
    for _ in range(NUM_BLOCKS):
        bp = (
            jnp.ones((1, EMB), jnp.float32),            # 0  ln1 weight
            jnp.zeros((1, EMB), jnp.float32),           # 1  ln1 bias
            normal(next(keys), (EMB, EMB)),             # 2  Wq (heads concatenated, no bias)
            normal(next(keys), (EMB, EMB)),             # 3  Wk
            normal(next(keys), (EMB, EMB)),             # 4  Wv
            normal(next(keys), (EMB, EMB)),             # 5  attention output projection
            jnp.zeros((1, EMB), jnp.float32),           # 6  proj bias
            jnp.ones((1, EMB), jnp.float32),            # 7  ln2 weight
            jnp.zeros((1, EMB), jnp.float32),           # 8  ln2 bias
            normal(next(keys), (EMB, 4 * EMB)),         # 9  FFN up
            jnp.zeros((1, 4 * EMB), jnp.float32),       # 10 FFN up bias
            normal(next(keys), (4 * EMB, EMB)),         # 11 FFN down
            jnp.zeros((1, EMB), jnp.float32),           # 12 FFN down bias
        )
        params["blocks"].append(bp)
    return params


if __name__ == "__main__":
    key = jax.random.PRNGKey(0)
    pkey, xkey = jax.random.split(key)
    params = init_params(pkey)
    packed = pack_params(params)
    tokens = jax.random.randint(xkey, (BATCH, CTX), 0, VOCAB, dtype=jnp.int32)

    logits = gpt_forward(tokens, packed)
    logits = jax.block_until_ready(logits)
    assert logits.shape == (BATCH, CTX, VOCAB)

    ref = gpt_reference(tokens, params)
    # Tolerance slightly looser than exact-f32: the in-kernel softmax uses the EUP
    # approximate reciprocal and the LN affines are pre-folded into the weights.
    if not jnp.allclose(logits, ref, atol=3e-4, rtol=3e-3):
        err = float(jnp.max(jnp.abs(logits - ref)))
        raise AssertionError(f"Pallas output mismatch vs reference (max abs err {err})")

    # TODO(synk): targets / cross-entropy-loss path and autoregressive generate() sampling loop
    # are not implemented (forward is the targets=None, logits-only path).
    print("KERNEL_OK")
</pallas_src>

<mosaic_0001>
module attributes {stable_mosaic.version = 11 : i64} {
  func.func @gpt_kernel(%arg0: i32, %arg1: memref<16x1xi32, #tpu.memory_space<vmem>>, %arg2: memref<64x32xf32, #tpu.memory_space<vmem>>, %arg3: memref<16x32xf32, #tpu.memory_space<vmem>>, %arg4: memref<2x32x32xf32, #tpu.memory_space<vmem>>, %arg5: memref<2x32x32xf32, #tpu.memory_space<vmem>>, %arg6: memref<2x32x32xf32, #tpu.memory_space<vmem>>, %arg7: memref<2x32x32xf32, #tpu.memory_space<vmem>>, %arg8: memref<2x32x128xf32, #tpu.memory_space<vmem>>, %arg9: memref<2x128x32xf32, #tpu.memory_space<vmem>>, %arg10: memref<2x8x128xf32, #tpu.memory_space<vmem>>, %arg11: memref<32x128xf32, #tpu.memory_space<vmem>>, %arg12: memref<1x128xf32, #tpu.memory_space<vmem>>, %arg13: memref<16x64xf32, #tpu.memory_space<vmem>>, %arg14: memref<64x32xf32, #tpu.memory_space<vmem>>, %arg15: memref<64x64xf32, #tpu.memory_space<vmem>>, %arg16: memref<16x128xf32, #tpu.memory_space<vmem>>) attributes {dimension_semantics = [#tpu.dimension_semantics<arbitrary>], iteration_bounds = array<i64: 1>, scalar_prefetch = 0 : i64, scratch_operands = 0 : i64, tpu.core_type = #tpu.core_type<tc>, window_params = [{pipeline_mode = #tpu.pipeline_mode<synchronous>, transform_indices = @transform_0, window_bounds = array<i64: 16, 1>}, {pipeline_mode = #tpu.pipeline_mode<synchronous>, transform_indices = @transform_1, window_bounds = array<i64: 64, 32>}, {pipeline_mode = #tpu.pipeline_mode<synchronous>, transform_indices = @transform_2, window_bounds = array<i64: 16, 32>}, {pipeline_mode = #tpu.pipeline_mode<synchronous>, transform_indices = @transform_3, window_bounds = array<i64: 2, 32, 32>}, {pipeline_mode = #tpu.pipeline_mode<synchronous>, transform_indices = @transform_4, window_bounds = array<i64: 2, 32, 32>}, {pipeline_mode = #tpu.pipeline_mode<synchronous>, transform_indices = @transform_5, window_bounds = array<i64: 2, 32, 32>}, {pipeline_mode = #tpu.pipeline_mode<synchronous>, transform_indices = @transform_6, window_bounds = array<i64: 2, 32, 32>}, {pipeline_mode = #tpu.pipeline_mode<synchronous>, transform_indices = @transform_7, window_bounds = array<i64: 2, 32, 128>}, {pipeline_mode = #tpu.pipeline_mode<synchronous>, transform_indices = @transform_8, window_bounds = array<i64: 2, 128, 32>}, {pipeline_mode = #tpu.pipeline_mode<synchronous>, transform_indices = @transform_9, window_bounds = array<i64: 2, 8, 128>}, {pipeline_mode = #tpu.pipeline_mode<synchronous>, transform_indices = @transform_10, window_bounds = array<i64: 32, 128>}, {pipeline_mode = #tpu.pipeline_mode<synchronous>, transform_indices = @transform_11, window_bounds = array<i64: 1, 128>}, {pipeline_mode = #tpu.pipeline_mode<synchronous>, transform_indices = @transform_12, window_bounds = array<i64: 16, 64>}, {pipeline_mode = #tpu.pipeline_mode<synchronous>, transform_indices = @transform_13, window_bounds = array<i64: 64, 32>}, {pipeline_mode = #tpu.pipeline_mode<synchronous>, transform_indices = @transform_14, window_bounds = array<i64: 64, 64>}, {pipeline_mode = #tpu.pipeline_mode<synchronous>, transform_indices = @transform_15, window_bounds = array<i64: 16, 128>}]} {
    %0 = tpu.iota {dimensions = array<i32: 1>} : vector<16x64xi32>
    %c0 = arith.constant 0 : index
    %c0_0 = arith.constant 0 : index
    %1 = vector.load %arg1[%c0, %c0_0] : memref<16x1xi32, #tpu.memory_space<vmem>>, vector<16x1xi32>
    %2 = vector.broadcast %1 : vector<16x1xi32> to vector<16x64xi32>
    %3 = arith.cmpi eq, %2, %0 : vector<16x64xi32>
    %4 = arith.extui %3 : vector<16x64xi1> to vector<16x64xi32>
    %5 = arith.sitofp %4 : vector<16x64xi32> to vector<16x64xf32>
    %c0_1 = arith.constant 0 : index
    %c0_2 = arith.constant 0 : index
    %6 = vector.load %arg2[%c0_1, %c0_2] : memref<64x32xf32, #tpu.memory_space<vmem>>, vector<64x32xf32>
    %cst = arith.constant dense<0.000000e+00> : vector<16x32xf32>
    %7 = tpu.matmul %5, %6, %cst {dimension_numbers = #tpu.dot_dimension_numbers<[1], [0], [0], [1], [0, 0, 1, 1], [], []>} : vector<16x64xf32>, vector<64x32xf32>, vector<16x32xf32> -> vector<16x32xf32>
    %c0_3 = arith.constant 0 : index
    %c0_4 = arith.constant 0 : index
    %8 = vector.load %arg3[%c0_3, %c0_4] : memref<16x32xf32, #tpu.memory_space<vmem>>, vector<16x32xf32>
    %9 = arith.addf %7, %8 : vector<16x32xf32>
    %c0_5 = arith.constant 0 : index
    %c0_6 = arith.constant 0 : index
    %10 = vector.load %arg13[%c0_5, %c0_6] : memref<16x64xf32, #tpu.memory_space<vmem>>, vector<16x64xf32>
    %c0_7 = arith.constant 0 : index
    %c0_8 = arith.constant 0 : index
    %11 = vector.load %arg14[%c0_7, %c0_8] : memref<64x32xf32, #tpu.memory_space<vmem>>, vector<64x32xf32>
    %c0_9 = arith.constant 0 : index
    %c0_10 = arith.constant 0 : index
    %12 = vector.load %arg15[%c0_9, %c0_10] : memref<64x64xf32, #tpu.memory_space<vmem>>, vector<64x64xf32>
    %c0_11 = arith.constant 0 : index
    %c0_12 = arith.constant 0 : index
    %c0_13 = arith.constant 0 : index
    %13 = vector.load %arg10[%c0_11, %c0_12, %c0_13] : memref<2x8x128xf32, #tpu.memory_space<vmem>>, vector<1x8x128xf32>
    %14 = vector.shape_cast %13 : vector<1x8x128xf32> to vector<8x128xf32>
    %15 = vector.extract_strided_slice %14 {offsets = [0, 0], sizes = [1, 32], strides = [1, 1]} : vector<8x128xf32> to vector<1x32xf32>
    %16 = vector.extract_strided_slice %14 {offsets = [1, 0], sizes = [1, 32], strides = [1, 1]} : vector<8x128xf32> to vector<1x32xf32>
    %17 = vector.extract_strided_slice %14 {offsets = [2, 0], sizes = [1, 32], strides = [1, 1]} : vector<8x128xf32> to vector<1x32xf32>
    %18 = vector.extract_strided_slice %14 {offsets = [3, 0], sizes = [1, 32], strides = [1, 1]} : vector<8x128xf32> to vector<1x32xf32>
    %19 = vector.extract_strided_slice %14 {offsets = [4, 0], sizes = [1, 128], strides = [1, 1]} : vector<8x128xf32> to vector<1x128xf32>
    %20 = vector.extract_strided_slice %14 {offsets = [5, 0], sizes = [1, 32], strides = [1, 1]} : vector<8x128xf32> to vector<1x32xf32>
    %cst_14 = arith.constant dense<0.000000e+00> : vector<16xf32>
    %21 = vector.multi_reduction <add>, %9, %cst_14 [1] : vector<16x32xf32> to vector<16xf32>
    %22 = vector.shape_cast %21 : vector<16xf32> to vector<16x1xf32>
    %cst_15 = arith.constant 3.200000e+01 : f32
    %23 = vector.broadcast %cst_15 : f32 to vector<16x1xf32>
    %24 = arith.divf %22, %23 : vector<16x1xf32>
    %25 = vector.broadcast %24 : vector<16x1xf32> to vector<16x32xf32>
    %26 = arith.subf %9, %25 : vector<16x32xf32>
    %27 = arith.mulf %26, %26 : vector<16x32xf32>
    %cst_16 = arith.constant dense<0.000000e+00> : vector<16xf32>
    %28 = vector.multi_reduction <add>, %27, %cst_16 [1] : vector<16x32xf32> to vector<16xf32>
    %29 = vector.shape_cast %28 : vector<16xf32> to vector<16x1xf32>
    %cst_17 = arith.constant 3.200000e+01 : f32
    %30 = vector.broadcast %cst_17 : f32 to vector<16x1xf32>
    %31 = arith.divf %29, %30 : vector<16x1xf32>
    %32 = vector.broadcast %24 : vector<16x1xf32> to vector<16x32xf32>
    %33 = arith.subf %9, %32 : vector<16x32xf32>
    %cst_18 = arith.constant 9.99999974E-6 : f32
    %34 = vector.broadcast %cst_18 : f32 to vector<16x1xf32>
    %35 = arith.addf %31, %34 : vector<16x1xf32>
    %36 = math.rsqrt %35 : vector<16x1xf32>
    %37 = vector.broadcast %36 : vector<16x1xf32> to vector<16x32xf32>
    %38 = arith.mulf %33, %37 : vector<16x32xf32>
    %c0_19 = arith.constant 0 : index
    %c0_20 = arith.constant 0 : index
    %c0_21 = arith.constant 0 : index
    %39 = vector.load %arg4[%c0_19, %c0_20, %c0_21] : memref<2x32x32xf32, #tpu.memory_space<vmem>>, vector<1x32x32xf32>
    %40 = vector.shape_cast %39 : vector<1x32x32xf32> to vector<32x32xf32>
    %cst_22 = arith.constant dense<0.000000e+00> : vector<16x32xf32>
    %41 = tpu.matmul %38, %40, %cst_22 {dimension_numbers = #tpu.dot_dimension_numbers<[1], [0], [0], [1], [0, 0, 1, 1], [], []>} : vector<16x32xf32>, vector<32x32xf32>, vector<16x32xf32> -> vector<16x32xf32>
    %42 = vector.broadcast %15 : vector<1x32xf32> to vector<16x32xf32>
    %43 = arith.addf %41, %42 : vector<16x32xf32>
    %c0_23 = arith.constant 0 : index
    %c0_24 = arith.constant 0 : index
    %c0_25 = arith.constant 0 : index
    %44 = vector.load %arg5[%c0_23, %c0_24, %c0_25] : memref<2x32x32xf32, #tpu.memory_space<vmem>>, vector<1x32x32xf32>
    %45 = vector.shape_cast %44 : vector<1x32x32xf32> to vector<32x32xf32>
    %cst_26 = arith.constant dense<0.000000e+00> : vector<16x32xf32>
    %46 = tpu.matmul %38, %45, %cst_26 {dimension_numbers = #tpu.dot_dimension_numbers<[1], [0], [0], [1], [0, 0, 1, 1], [], []>} : vector<16x32xf32>, vector<32x32xf32>, vector<16x32xf32> -> vector<16x32xf32>
    %47 = vector.broadcast %16 : vector<1x32xf32> to vector<16x32xf32>
    %48 = arith.addf %46, %47 : vector<16x32xf32>
    %c0_27 = arith.constant 0 : index
    %c0_28 = arith.constant 0 : index
    %c0_29 = arith.constant 0 : index
    %49 = vector.load %arg6[%c0_27, %c0_28, %c0_29] : memref<2x32x32xf32, #tpu.memory_space<vmem>>, vector<1x32x32xf32>
    %50 = vector.shape_cast %49 : vector<1x32x32xf32> to vector<32x32xf32>
    %cst_30 = arith.constant dense<0.000000e+00> : vector<16x32xf32>
    %51 = tpu.matmul %38, %50, %cst_30 {dimension_numbers = #tpu.dot_dimension_numbers<[1], [0], [0], [1], [0, 0, 1, 1], [], []>} : vector<16x32xf32>, vector<32x32xf32>, vector<16x32xf32> -> vector<16x32xf32>
    %52 = vector.broadcast %17 : vector<1x32xf32> to vector<16x32xf32>
    %53 = arith.addf %51, %52 : vector<16x32xf32>
    %54 = tpu.concatenate %48, %48, %48, %48 in 0 : vector<16x32xf32>, vector<16x32xf32>, vector<16x32xf32>, vector<16x32xf32> -> vector<64x32xf32>
    %55 = arith.mulf %54, %11 : vector<64x32xf32>
    %56 = tpu.concatenate %53, %53, %53, %53 in 0 : vector<16x32xf32>, vector<16x32xf32>, vector<16x32xf32>, vector<16x32xf32> -> vector<64x32xf32>
    %57 = arith.mulf %56, %11 : vector<64x32xf32>
    %cst_31 = arith.constant dense<0.000000e+00> : vector<16x64xf32>
    %58 = tpu.matmul %43, %55, %cst_31 {dimension_numbers = #tpu.dot_dimension_numbers<[1], [1], [0], [0], [0, 0, 1, 0], [], []>} : vector<16x32xf32>, vector<64x32xf32>, vector<16x64xf32> -> vector<16x64xf32>
    %59 = arith.addf %58, %10 : vector<16x64xf32>
    %cst_32 = arith.constant dense<0xFF800000> : vector<16xf32>
    %60 = vector.multi_reduction <maximumf>, %59, %cst_32 [1] : vector<16x64xf32> to vector<16xf32>
    %61 = vector.shape_cast %60 : vector<16xf32> to vector<16x1xf32>
    %62 = vector.broadcast %61 : vector<16x1xf32> to vector<16x64xf32>
    %63 = arith.subf %59, %62 : vector<16x64xf32>
    %64 = math.exp %63 : vector<16x64xf32>
    %cst_33 = arith.constant dense<0.000000e+00> : vector<16x64xf32>
    %65 = tpu.matmul %64, %12, %cst_33 {dimension_numbers = #tpu.dot_dimension_numbers<[1], [0], [0], [1], [0, 0, 1, 1], [], []>} : vector<16x64xf32>, vector<64x64xf32>, vector<16x64xf32> -> vector<16x64xf32>
    %cst_34 = arith.constant 1.000000e-30 : f32
    %66 = vector.broadcast %cst_34 : f32 to vector<16x64xf32>
    %67 = arith.maximumf %65, %66 : vector<16x64xf32>
    %68 = tpu.reciprocal %67 {approx = true} : vector<16x64xf32> -> vector<16x64xf32>
    %69 = arith.mulf %64, %68 : vector<16x64xf32>
    %cst_35 = arith.constant dense<0.000000e+00> : vector<16x32xf32>
    %70 = tpu.matmul %69, %57, %cst_35 {dimension_numbers = #tpu.dot_dimension_numbers<[1], [0], [0], [1], [0, 0, 1, 1], [], []>} : vector<16x64xf32>, vector<64x32xf32>, vector<16x32xf32> -> vector<16x32xf32>
    %c0_36 = arith.constant 0 : index
    %c0_37 = arith.constant 0 : index
    %c0_38 = arith.constant 0 : index
    %71 = vector.load %arg7[%c0_36, %c0_37, %c0_38] : memref<2x32x32xf32, #tpu.memory_space<vmem>>, vector<1x32x32xf32>
    %72 = vector.shape_cast %71 : vector<1x32x32xf32> to vector<32x32xf32>
    %cst_39 = arith.constant dense<0.000000e+00> : vector<16x32xf32>
    %73 = tpu.matmul %70, %72, %cst_39 {dimension_numbers = #tpu.dot_dimension_numbers<[1], [0], [0], [1], [0, 0, 1, 1], [], []>} : vector<16x32xf32>, vector<32x32xf32>, vector<16x32xf32> -> vector<16x32xf32>
    %74 = arith.addf %9, %73 : vector<16x32xf32>
    %75 = vector.broadcast %18 : vector<1x32xf32> to vector<16x32xf32>
    %76 = arith.addf %74, %75 : vector<16x32xf32>
    %cst_40 = arith.constant dense<0.000000e+00> : vector<16xf32>
    %77 = vector.multi_reduction <add>, %76, %cst_40 [1] : vector<16x32xf32> to vector<16xf32>
    %78 = vector.shape_cast %77 : vector<16xf32> to vector<16x1xf32>
    %cst_41 = arith.constant 3.200000e+01 : f32
    %79 = vector.broadcast %cst_41 : f32 to vector<16x1xf32>
    %80 = arith.divf %78, %79 : vector<16x1xf32>
    %81 = vector.broadcast %80 : vector<16x1xf32> to vector<16x32xf32>
    %82 = arith.subf %76, %81 : vector<16x32xf32>
    %83 = arith.mulf %82, %82 : vector<16x32xf32>
    %cst_42 = arith.constant dense<0.000000e+00> : vector<16xf32>
    %84 = vector.multi_reduction <add>, %83, %cst_42 [1] : vector<16x32xf32> to vector<16xf32>
    %85 = vector.shape_cast %84 : vector<16xf32> to vector<16x1xf32>
    %cst_43 = arith.constant 3.200000e+01 : f32
    %86 = vector.broadcast %cst_43 : f32 to vector<16x1xf32>
    %87 = arith.divf %85, %86 : vector<16x1xf32>
    %88 = vector.broadcast %80 : vector<16x1xf32> to vector<16x32xf32>
    %89 = arith.subf %76, %88 : vector<16x32xf32>
    %cst_44 = arith.constant 9.99999974E-6 : f32
    %90 = vector.broadcast %cst_44 : f32 to vector<16x1xf32>
    %91 = arith.addf %87, %90 : vector<16x1xf32>
    %92 = math.rsqrt %91 : vector<16x1xf32>
    %93 = vector.broadcast %92 : vector<16x1xf32> to vector<16x32xf32>
    %94 = arith.mulf %89, %93 : vector<16x32xf32>
    %c0_45 = arith.constant 0 : index
    %c0_46 = arith.constant 0 : index
    %c0_47 = arith.constant 0 : index
    %95 = vector.load %arg8[%c0_45, %c0_46, %c0_47] : memref<2x32x128xf32, #tpu.memory_space<vmem>>, vector<1x32x128xf32>
    %96 = vector.shape_cast %95 : vector<1x32x128xf32> to vector<32x128xf32>
    %cst_48 = arith.constant dense<0.000000e+00> : vector<16x128xf32>
    %97 = tpu.matmul %94, %96, %cst_48 {dimension_numbers = #tpu.dot_dimension_numbers<[1], [0], [0], [1], [0, 0, 1, 1], [], []>} : vector<16x32xf32>, vector<32x128xf32>, vector<16x128xf32> -> vector<16x128xf32>
    %98 = vector.broadcast %19 : vector<1x128xf32> to vector<16x128xf32>
    %99 = arith.addf %97, %98 : vector<16x128xf32>
    %cst_49 = arith.constant 0.000000e+00 : f32
    %100 = vector.broadcast %cst_49 : f32 to vector<16x128xf32>
    %101 = arith.maximumf %99, %100 : vector<16x128xf32>
    %c0_50 = arith.constant 0 : index
    %c0_51 = arith.constant 0 : index
    %c0_52 = arith.constant 0 : index
    %102 = vector.load %arg9[%c0_50, %c0_51, %c0_52] : memref<2x128x32xf32, #tpu.memory_space<vmem>>, vector<1x128x32xf32>
    %103 = vector.shape_cast %102 : vector<1x128x32xf32> to vector<128x32xf32>
    %cst_53 = arith.constant dense<0.000000e+00> : vector<16x32xf32>
    %104 = tpu.matmul %101, %103, %cst_53 {dimension_numbers = #tpu.dot_dimension_numbers<[1], [0], [0], [1], [0, 0, 1, 1], [], []>} : vector<16x128xf32>, vector<128x32xf32>, vector<16x32xf32> -> vector<16x32xf32>
    %105 = arith.addf %76, %104 : vector<16x32xf32>
    %106 = vector.broadcast %20 : vector<1x32xf32> to vector<16x32xf32>
    %107 = arith.addf %105, %106 : vector<16x32xf32>
    %c1 = arith.constant 1 : index
    %c0_54 = arith.constant 0 : index
    %c0_55 = arith.constant 0 : index
    %108 = vector.load %arg10[%c1, %c0_54, %c0_55] : memref<2x8x128xf32, #tpu.memory_space<vmem>>, vector<1x8x128xf32>
    %109 = vector.shape_cast %108 : vector<1x8x128xf32> to vector<8x128xf32>
    %110 = vector.extract_strided_slice %109 {offsets = [0, 0], sizes = [1, 32], strides = [1, 1]} : vector<8x128xf32> to vector<1x32xf32>
    %111 = vector.extract_strided_slice %109 {offsets = [1, 0], sizes = [1, 32], strides = [1, 1]} : vector<8x128xf32> to vector<1x32xf32>
    %112 = vector.extract_strided_slice %109 {offsets = [2, 0], sizes = [1, 32], strides = [1, 1]} : vector<8x128xf32> to vector<1x32xf32>
    %113 = vector.extract_strided_slice %109 {offsets = [3, 0], sizes = [1, 32], strides = [1, 1]} : vector<8x128xf32> to vector<1x32xf32>
    %114 = vector.extract_strided_slice %109 {offsets = [4, 0], sizes = [1, 128], strides = [1, 1]} : vector<8x128xf32> to vector<1x128xf32>
    %115 = vector.extract_strided_slice %109 {offsets = [5, 0], sizes = [1, 32], strides = [1, 1]} : vector<8x128xf32> to vector<1x32xf32>
    %cst_56 = arith.constant dense<0.000000e+00> : vector<16xf32>
    %116 = vector.multi_reduction <add>, %107, %cst_56 [1] : vector<16x32xf32> to vector<16xf32>
    %117 = vector.shape_cast %116 : vector<16xf32> to vector<16x1xf32>
    %cst_57 = arith.constant 3.200000e+01 : f32
    %118 = vector.broadcast %cst_57 : f32 to vector<16x1xf32>
    %119 = arith.divf %117, %118 : vector<16x1xf32>
    %120 = vector.broadcast %119 : vector<16x1xf32> to vector<16x32xf32>
    %121 = arith.subf %107, %120 : vector<16x32xf32>
    %122 = arith.mulf %121, %121 : vector<16x32xf32>
    %cst_58 = arith.constant dense<0.000000e+00> : vector<16xf32>
    %123 = vector.multi_reduction <add>, %122, %cst_58 [1] : vector<16x32xf32> to vector<16xf32>
    %124 = vector.shape_cast %123 : vector<16xf32> to vector<16x1xf32>
    %cst_59 = arith.constant 3.200000e+01 : f32
    %125 = vector.broadcast %cst_59 : f32 to vector<16x1xf32>
    %126 = arith.divf %124, %125 : vector<16x1xf32>
    %127 = vector.broadcast %119 : vector<16x1xf32> to vector<16x32xf32>
    %128 = arith.subf %107, %127 : vector<16x32xf32>
    %cst_60 = arith.constant 9.99999974E-6 : f32
    %129 = vector.broadcast %cst_60 : f32 to vector<16x1xf32>
    %130 = arith.addf %126, %129 : vector<16x1xf32>
    %131 = math.rsqrt %130 : vector<16x1xf32>
    %132 = vector.broadcast %131 : vector<16x1xf32> to vector<16x32xf32>
    %133 = arith.mulf %128, %132 : vector<16x32xf32>
    %c1_61 = arith.constant 1 : index
    %c0_62 = arith.constant 0 : index
    %c0_63 = arith.constant 0 : index
    %134 = vector.load %arg4[%c1_61, %c0_62, %c0_63] : memref<2x32x32xf32, #tpu.memory_space<vmem>>, vector<1x32x32xf32>
    %135 = vector.shape_cast %134 : vector<1x32x32xf32> to vector<32x32xf32>
    %cst_64 = arith.constant dense<0.000000e+00> : vector<16x32xf32>
    %136 = tpu.matmul %133, %135, %cst_64 {dimension_numbers = #tpu.dot_dimension_numbers<[1], [0], [0], [1], [0, 0, 1, 1], [], []>} : vector<16x32xf32>, vector<32x32xf32>, vector<16x32xf32> -> vector<16x32xf32>
    %137 = vector.broadcast %110 : vector<1x32xf32> to vector<16x32xf32>
    %138 = arith.addf %136, %137 : vector<16x32xf32>
    %c1_65 = arith.constant 1 : index
    %c0_66 = arith.constant 0 : index
    %c0_67 = arith.constant 0 : index
    %139 = vector.load %arg5[%c1_65, %c0_66, %c0_67] : memref<2x32x32xf32, #tpu.memory_space<vmem>>, vector<1x32x32xf32>
    %140 = vector.shape_cast %139 : vector<1x32x32xf32> to vector<32x32xf32>
    %cst_68 = arith.constant dense<0.000000e+00> : vector<16x32xf32>
    %141 = tpu.matmul %133, %140, %cst_68 {dimension_numbers = #tpu.dot_dimension_numbers<[1], [0], [0], [1], [0, 0, 1, 1], [], []>} : vector<16x32xf32>, vector<32x32xf32>, vector<16x32xf32> -> vector<16x32xf32>
    %142 = vector.broadcast %111 : vector<1x32xf32> to vector<16x32xf32>
    %143 = arith.addf %141, %142 : vector<16x32xf32>
    %c1_69 = arith.constant 1 : index
    %c0_70 = arith.constant 0 : index
    %c0_71 = arith.constant 0 : index
    %144 = vector.load %arg6[%c1_69, %c0_70, %c0_71] : memref<2x32x32xf32, #tpu.memory_space<vmem>>, vector<1x32x32xf32>
    %145 = vector.shape_cast %144 : vector<1x32x32xf32> to vector<32x32xf32>
    %cst_72 = arith.constant dense<0.000000e+00> : vector<16x32xf32>
    %146 = tpu.matmul %133, %145, %cst_72 {dimension_numbers = #tpu.dot_dimension_numbers<[1], [0], [0], [1], [0, 0, 1, 1], [], []>} : vector<16x32xf32>, vector<32x32xf32>, vector<16x32xf32> -> vector<16x32xf32>
    %147 = vector.broadcast %112 : vector<1x32xf32> to vector<16x32xf32>
    %148 = arith.addf %146, %147 : vector<16x32xf32>
    %149 = tpu.concatenate %143, %143, %143, %143 in 0 : vector<16x32xf32>, vector<16x32xf32>, vector<16x32xf32>, vector<16x32xf32> -> vector<64x32xf32>
    %150 = arith.mulf %149, %11 : vector<64x32xf32>
    %151 = tpu.concatenate %148, %148, %148, %148 in 0 : vector<16x32xf32>, vector<16x32xf32>, vector<16x32xf32>, vector<16x32xf32> -> vector<64x32xf32>
    %152 = arith.mulf %151, %11 : vector<64x32xf32>
    %cst_73 = arith.constant dense<0.000000e+00> : vector<16x64xf32>
    %153 = tpu.matmul %138, %150, %cst_73 {dimension_numbers = #tpu.dot_dimension_numbers<[1], [1], [0], [0], [0, 0, 1, 0], [], []>} : vector<16x32xf32>, vector<64x32xf32>, vector<16x64xf32> -> vector<16x64xf32>
    %154 = arith.addf %153, %10 : vector<16x64xf32>
    %cst_74 = arith.constant dense<0xFF800000> : vector<16xf32>
    %155 = vector.multi_reduction <maximumf>, %154, %cst_74 [1] : vector<16x64xf32> to vector<16xf32>
    %156 = vector.shape_cast %155 : vector<16xf32> to vector<16x1xf32>
    %157 = vector.broadcast %156 : vector<16x1xf32> to vector<16x64xf32>
    %158 = arith.subf %154, %157 : vector<16x64xf32>
    %159 = math.exp %158 : vector<16x64xf32>
    %cst_75 = arith.constant dense<0.000000e+00> : vector<16x64xf32>
    %160 = tpu.matmul %159, %12, %cst_75 {dimension_numbers = #tpu.dot_dimension_numbers<[1], [0], [0], [1], [0, 0, 1, 1], [], []>} : vector<16x64xf32>, vector<64x64xf32>, vector<16x64xf32> -> vector<16x64xf32>
    %cst_76 = arith.constant 1.000000e-30 : f32
    %161 = vector.broadcast %cst_76 : f32 to vector<16x64xf32>
    %162 = arith.maximumf %160, %161 : vector<16x64xf32>
    %163 = tpu.reciprocal %162 {approx = true} : vector<16x64xf32> -> vector<16x64xf32>
    %164 = arith.mulf %159, %163 : vector<16x64xf32>
    %cst_77 = arith.constant dense<0.000000e+00> : vector<16x32xf32>
    %165 = tpu.matmul %164, %152, %cst_77 {dimension_numbers = #tpu.dot_dimension_numbers<[1], [0], [0], [1], [0, 0, 1, 1], [], []>} : vector<16x64xf32>, vector<64x32xf32>, vector<16x32xf32> -> vector<16x32xf32>
    %c1_78 = arith.constant 1 : index
    %c0_79 = arith.constant 0 : index
    %c0_80 = arith.constant 0 : index
    %166 = vector.load %arg7[%c1_78, %c0_79, %c0_80] : memref<2x32x32xf32, #tpu.memory_space<vmem>>, vector<1x32x32xf32>
    %167 = vector.shape_cast %166 : vector<1x32x32xf32> to vector<32x32xf32>
    %cst_81 = arith.constant dense<0.000000e+00> : vector<16x32xf32>
    %168 = tpu.matmul %165, %167, %cst_81 {dimension_numbers = #tpu.dot_dimension_numbers<[1], [0], [0], [1], [0, 0, 1, 1], [], []>} : vector<16x32xf32>, vector<32x32xf32>, vector<16x32xf32> -> vector<16x32xf32>
    %169 = arith.addf %107, %168 : vector<16x32xf32>
    %170 = vector.broadcast %113 : vector<1x32xf32> to vector<16x32xf32>
    %171 = arith.addf %169, %170 : vector<16x32xf32>
    %cst_82 = arith.constant dense<0.000000e+00> : vector<16xf32>
    %172 = vector.multi_reduction <add>, %171, %cst_82 [1] : vector<16x32xf32> to vector<16xf32>
    %173 = vector.shape_cast %172 : vector<16xf32> to vector<16x1xf32>
    %cst_83 = arith.constant 3.200000e+01 : f32
    %174 = vector.broadcast %cst_83 : f32 to vector<16x1xf32>
    %175 = arith.divf %173, %174 : vector<16x1xf32>
    %176 = vector.broadcast %175 : vector<16x1xf32> to vector<16x32xf32>
    %177 = arith.subf %171, %176 : vector<16x32xf32>
    %178 = arith.mulf %177, %177 : vector<16x32xf32>
    %cst_84 = arith.constant dense<0.000000e+00> : vector<16xf32>
    %179 = vector.multi_reduction <add>, %178, %cst_84 [1] : vector<16x32xf32> to vector<16xf32>
    %180 = vector.shape_cast %179 : vector<16xf32> to vector<16x1xf32>
    %cst_85 = arith.constant 3.200000e+01 : f32
    %181 = vector.broadcast %cst_85 : f32 to vector<16x1xf32>
    %182 = arith.divf %180, %181 : vector<16x1xf32>
    %183 = vector.broadcast %175 : vector<16x1xf32> to vector<16x32xf32>
    %184 = arith.subf %171, %183 : vector<16x32xf32>
    %cst_86 = arith.constant 9.99999974E-6 : f32
    %185 = vector.broadcast %cst_86 : f32 to vector<16x1xf32>
    %186 = arith.addf %182, %185 : vector<16x1xf32>
    %187 = math.rsqrt %186 : vector<16x1xf32>
    %188 = vector.broadcast %187 : vector<16x1xf32> to vector<16x32xf32>
    %189 = arith.mulf %184, %188 : vector<16x32xf32>
    %c1_87 = arith.constant 1 : index
    %c0_88 = arith.constant 0 : index
    %c0_89 = arith.constant 0 : index
    %190 = vector.load %arg8[%c1_87, %c0_88, %c0_89] : memref<2x32x128xf32, #tpu.memory_space<vmem>>, vector<1x32x128xf32>
    %191 = vector.shape_cast %190 : vector<1x32x128xf32> to vector<32x128xf32>
    %cst_90 = arith.constant dense<0.000000e+00> : vector<16x128xf32>
    %192 = tpu.matmul %189, %191, %cst_90 {dimension_numbers = #tpu.dot_dimension_numbers<[1], [0], [0], [1], [0, 0, 1, 1], [], []>} : vector<16x32xf32>, vector<32x128xf32>, vector<16x128xf32> -> vector<16x128xf32>
    %193 = vector.broadcast %114 : vector<1x128xf32> to vector<16x128xf32>
    %194 = arith.addf %192, %193 : vector<16x128xf32>
    %cst_91 = arith.constant 0.000000e+00 : f32
    %195 = vector.broadcast %cst_91 : f32 to vector<16x128xf32>
    %196 = arith.maximumf %194, %195 : vector<16x128xf32>
    %c1_92 = arith.constant 1 : index
    %c0_93 = arith.constant 0 : index
    %c0_94 = arith.constant 0 : index
    %197 = vector.load %arg9[%c1_92, %c0_93, %c0_94] : memref<2x128x32xf32, #tpu.memory_space<vmem>>, vector<1x128x32xf32>
    %198 = vector.shape_cast %197 : vector<1x128x32xf32> to vector<128x32xf32>
    %cst_95 = arith.constant dense<0.000000e+00> : vector<16x32xf32>
    %199 = tpu.matmul %196, %198, %cst_95 {dimension_numbers = #tpu.dot_dimension_numbers<[1], [0], [0], [1], [0, 0, 1, 1], [], []>} : vector<16x128xf32>, vector<128x32xf32>, vector<16x32xf32> -> vector<16x32xf32>
    %200 = arith.addf %171, %199 : vector<16x32xf32>
    %201 = vector.broadcast %115 : vector<1x32xf32> to vector<16x32xf32>
    %202 = arith.addf %200, %201 : vector<16x32xf32>
    %cst_96 = arith.constant dense<0.000000e+00> : vector<16xf32>
    %203 = vector.multi_reduction <add>, %202, %cst_96 [1] : vector<16x32xf32> to vector<16xf32>
    %204 = vector.shape_cast %203 : vector<16xf32> to vector<16x1xf32>
    %cst_97 = arith.constant 3.200000e+01 : f32
    %205 = vector.broadcast %cst_97 : f32 to vector<16x1xf32>
    %206 = arith.divf %204, %205 : vector<16x1xf32>
    %207 = vector.broadcast %206 : vector<16x1xf32> to vector<16x32xf32>
    %208 = arith.subf %202, %207 : vector<16x32xf32>
    %209 = arith.mulf %208, %208 : vector<16x32xf32>
    %cst_98 = arith.constant dense<0.000000e+00> : vector<16xf32>
    %210 = vector.multi_reduction <add>, %209, %cst_98 [1] : vector<16x32xf32> to vector<16xf32>
    %211 = vector.shape_cast %210 : vector<16xf32> to vector<16x1xf32>
    %cst_99 = arith.constant 3.200000e+01 : f32
    %212 = vector.broadcast %cst_99 : f32 to vector<16x1xf32>
    %213 = arith.divf %211, %212 : vector<16x1xf32>
    %214 = vector.broadcast %206 : vector<16x1xf32> to vector<16x32xf32>
    %215 = arith.subf %202, %214 : vector<16x32xf32>
    %cst_100 = arith.constant 9.99999974E-6 : f32
    %216 = vector.broadcast %cst_100 : f32 to vector<16x1xf32>
    %217 = arith.addf %213, %216 : vector<16x1xf32>
    %218 = math.rsqrt %217 : vector<16x1xf32>
    %219 = vector.broadcast %218 : vector<16x1xf32> to vector<16x32xf32>
    %220 = arith.mulf %215, %219 : vector<16x32xf32>
    %c0_101 = arith.constant 0 : index
    %c0_102 = arith.constant 0 : index
    %221 = vector.load %arg11[%c0_101, %c0_102] : memref<32x128xf32, #tpu.memory_space<vmem>>, vector<32x128xf32>
    %cst_103 = arith.constant dense<0.000000e+00> : vector<16x128xf32>
    %222 = tpu.matmul %220, %221, %cst_103 {dimension_numbers = #tpu.dot_dimension_numbers<[1], [0], [0], [1], [0, 0, 1, 1], [], []>} : vector<16x32xf32>, vector<32x128xf32>, vector<16x128xf32> -> vector<16x128xf32>
    %c0_104 = arith.constant 0 : index
    %c0_105 = arith.constant 0 : index
    %223 = vector.load %arg12[%c0_104, %c0_105] : memref<1x128xf32, #tpu.memory_space<vmem>>, vector<1x128xf32>
    %224 = vector.broadcast %223 : vector<1x128xf32> to vector<16x128xf32>
    %225 = arith.addf %222, %224 : vector<16x128xf32>
    %c0_106 = arith.constant 0 : index
    %c0_107 = arith.constant 0 : index
    %226 = vector.load %arg16[%c0_106, %c0_107] : memref<16x128xf32, #tpu.memory_space<vmem>>, vector<16x128xf32>
    tpu.vector_store %arg16[%c0_106, %c0_107], %225 {strides = array<i32>} : memref<16x128xf32, #tpu.memory_space<vmem>>, vector<16x128xf32>,
    return
  }
  func.func @transform_0(%arg0: i32) -> (i32, i32) {
    %c0_i32 = arith.constant 0 : i32
    %c0_i32_0 = arith.constant 0 : i32
    %c0_i32_1 = arith.constant 0 : i32
    return %c0_i32, %c0_i32_0 : i32, i32
  }
  func.func @transform_1(%arg0: i32) -> (i32, i32) {
    %c0_i32 = arith.constant 0 : i32
    %c0_i32_0 = arith.constant 0 : i32
    %c0_i32_1 = arith.constant 0 : i32
    return %c0_i32, %c0_i32_0 : i32, i32
  }
  func.func @transform_2(%arg0: i32) -> (i32, i32) {
    %c0_i32 = arith.constant 0 : i32
    %c0_i32_0 = arith.constant 0 : i32
    %c0_i32_1 = arith.constant 0 : i32
    return %c0_i32, %c0_i32_0 : i32, i32
  }
  func.func @transform_3(%arg0: i32) -> (i32, i32, i32) {
    %c0_i32 = arith.constant 0 : i32
    %c0_i32_0 = arith.constant 0 : i32
    %c0_i32_1 = arith.constant 0 : i32
    %c0_i32_2 = arith.constant 0 : i32
    return %c0_i32, %c0_i32_0, %c0_i32_1 : i32, i32, i32
  }
  func.func @transform_4(%arg0: i32) -> (i32, i32, i32) {
    %c0_i32 = arith.constant 0 : i32
    %c0_i32_0 = arith.constant 0 : i32
    %c0_i32_1 = arith.constant 0 : i32
    %c0_i32_2 = arith.constant 0 : i32
    return %c0_i32, %c0_i32_0, %c0_i32_1 : i32, i32, i32
  }
  func.func @transform_5(%arg0: i32) -> (i32, i32, i32) {
    %c0_i32 = arith.constant 0 : i32
    %c0_i32_0 = arith.constant 0 : i32
    %c0_i32_1 = arith.constant 0 : i32
    %c0_i32_2 = arith.constant 0 : i32
    return %c0_i32, %c0_i32_0, %c0_i32_1 : i32, i32, i32
  }
  func.func @transform_6(%arg0: i32) -> (i32, i32, i32) {
    %c0_i32 = arith.constant 0 : i32
    %c0_i32_0 = arith.constant 0 : i32
    %c0_i32_1 = arith.constant 0 : i32
    %c0_i32_2 = arith.constant 0 : i32
    return %c0_i32, %c0_i32_0, %c0_i32_1 : i32, i32, i32
  }
  func.func @transform_7(%arg0: i32) -> (i32, i32, i32) {
    %c0_i32 = arith.constant 0 : i32
    %c0_i32_0 = arith.constant 0 : i32
    %c0_i32_1 = arith.constant 0 : i32
    %c0_i32_2 = arith.constant 0 : i32
    return %c0_i32, %c0_i32_0, %c0_i32_1 : i32, i32, i32
  }
  func.func @transform_8(%arg0: i32) -> (i32, i32, i32) {
    %c0_i32 = arith.constant 0 : i32
    %c0_i32_0 = arith.constant 0 : i32
    %c0_i32_1 = arith.constant 0 : i32
    %c0_i32_2 = arith.constant 0 : i32
    return %c0_i32, %c0_i32_0, %c0_i32_1 : i32, i32, i32
  }
  func.func @transform_9(%arg0: i32) -> (i32, i32, i32) {
    %c0_i32 = arith.constant 0 : i32
    %c0_i32_0 = arith.constant 0 : i32
    %c0_i32_1 = arith.constant 0 : i32
    %c0_i32_2 = arith.constant 0 : i32
    return %c0_i32, %c0_i32_0, %c0_i32_1 : i32, i32, i32
  }
  func.func @transform_10(%arg0: i32) -> (i32, i32) {
    %c0_i32 = arith.constant 0 : i32
    %c0_i32_0 = arith.constant 0 : i32
    %c0_i32_1 = arith.constant 0 : i32
    return %c0_i32, %c0_i32_0 : i32, i32
  }
  func.func @transform_11(%arg0: i32) -> (i32, i32) {
    %c0_i32 = arith.constant 0 : i32
    %c0_i32_0 = arith.constant 0 : i32
    %c0_i32_1 = arith.constant 0 : i32
    return %c0_i32, %c0_i32_0 : i32, i32
  }
  func.func @transform_12(%arg0: i32) -> (i32, i32) {
    %c0_i32 = arith.constant 0 : i32
    %c0_i32_0 = arith.constant 0 : i32
    %c0_i32_1 = arith.constant 0 : i32
    return %c0_i32, %c0_i32_0 : i32, i32
  }
  func.func @transform_13(%arg0: i32) -> (i32, i32) {
    %c0_i32 = arith.constant 0 : i32
    %c0_i32_0 = arith.constant 0 : i32
    %c0_i32_1 = arith.constant 0 : i32
    return %c0_i32, %c0_i32_0 : i32, i32
  }
  func.func @transform_14(%arg0: i32) -> (i32, i32) {
    %c0_i32 = arith.constant 0 : i32
    %c0_i32_0 = arith.constant 0 : i32
    %c0_i32_1 = arith.constant 0 : i32
    return %c0_i32, %c0_i32_0 : i32, i32
  }
  func.func @transform_15(%arg0: i32) -> (i32, i32) {
    %c0_i32 = arith.constant 0 : i32
    %c0_i32_0 = arith.constant 0 : i32
    %c0_i32_1 = arith.constant 0 : i32
    return %c0_i32, %c0_i32_0 : i32, i32
  }
}

</mosaic_0001>

<bundles_post_ra>
// kernel: tpu_custom_call.1
= control target key start
LH: loop header
LB: loop body
LE: loop exit
PB: predicated region body
PF: predicated region fallthrough
CT: control target
= control target key end

     0   :  { %v3040_v2 = vmov 0   ;;  %s3747_s0 = inlined_call_operand.vmem [shape: s32[16,1], index: 0, kind: input, shape index: {}]   ;;  %s3748_s1 = inlined_call_operand.vmem [shape: f32[64,32], index: 1, kind: input, shape index: {}]   ;;  %s3749_s2 = inlined_call_operand.vmem [shape: f32[16,32], index: 2, kind: input, shape index: {}]   ;;  %s3750_s3 = inlined_call_operand.vmem [shape: f32[2,32,32], index: 3, kind: input, shape index: {}]   ;;  %s3751_s4 = inlined_call_operand.vmem [shape: f32[2,32,32], index: 4, kind: input, shape index: {}]   ;;  %s3752_s5 = inlined_call_operand.vmem [shape: f32[2,32,32], index: 5, kind: input, shape index: {}]   ;;  %s3753_s6 = inlined_call_operand.vmem [shape: f32[2,32,32], index: 6, kind: input, shape index: {}]   ;;  %s3754_s7 = inlined_call_operand.vmem [shape: f32[2,32,128], index: 7, kind: input, shape index: {}]   ;;  %s3755_s8 = inlined_call_operand.vmem [shape: f32[2,128,32], index: 8, kind: input, shape index: {}]   ;;  %s3756_s9 = inlined_call_operand.vmem [shape: f32[2,8,128], index: 9, kind: input, shape index: {}]   ;;  %s3757_s10 = inlined_call_operand.vmem [shape: f32[32,128], index: 10, kind: input, shape index: {}]   ;;  %s3758_s11 = inlined_call_operand.vmem [shape: f32[1,128], index: 11, kind: input, shape index: {}]   ;;  %s3759_s12 = inlined_call_operand.vmem [shape: f32[16,64], index: 12, kind: input, shape index: {}]   ;;  %s3760_s13 = inlined_call_operand.vmem [shape: f32[64,32], index: 13, kind: input, shape index: {}]   ;;  %s3761_s14 = inlined_call_operand.vmem [shape: f32[64,64], index: 14, kind: input, shape index: {}]   ;;  %s3762_s15 = inlined_call_operand.hbm [shape: f32[16,128], index: 15, kind: output, shape index: {}]  }
   0x1   :  { %v53_v0 = vld [vmem:[%s3747_s0] sm:$0xff]  ;;  %2979 = vset.pattern.permute.xlu0 %v3040_v2  ;;  %v68_v3 = vld [vmem:[%s3748_s1 + $0x8] sm:$0xff]  ;;  %v69_v4 = vld [vmem:[%s3748_s1 + $0x10] sm:$0xff] }
   0x2   :  { %v67_v1 = vld [vmem:[%s3748_s1] sm:$0xff]  ;;  %v70_v5 = vld [vmem:[%s3748_s1 + $0x18] sm:$0xff]  ;;  %56 = vperm.xlu0 %2979, %v53_v0   ;;  %v54_v6 = vld [vmem:[%s3747_s0 + $0x8] sm:$0xff] }
   0x3   :  { %v2694_v7 = vpack.c.bf16 %v68_v3, %v67_v1  ;;  %v2698_v8 = vpack.c.bf16 %v70_v5, %v69_v4  ;;  %v71_v9 = vld [vmem:[%s3748_s1 + $0x20] sm:$0xff]  ;;  %v72_v10 = vld [vmem:[%s3748_s1 + $0x28] sm:$0xff] }
   0x4   :  { %20 = vsyncpa [#allocation3], 0  ;;  %v2702_v11 = vpack.c.bf16 %v72_v10, %v71_v9  ;;  %v73_v12 = vld [vmem:[%s3748_s1 + $0x30] sm:$0xff]  ;;  %v74_v13 = vld [vmem:[%s3748_s1 + $0x38] sm:$0xff]  ;;  %v51_v15 = vlaneseq  ;;  %vm77_vm0 = vcmask 523264   ;;  %v3041_v18 = vmov 0.0  }
   0x5   :  { %2695 = vmatprep.subr.bf16.mxu1 %v2694_v7  ;;  %v2706_v14 = vpack.c.bf16 %v74_v13, %v73_v12  ;;  %v75_v22 = vld [vmem:[%s3749_s2] sm:$0xff]  ;;  %v76_v24 = vld [vmem:[%s3749_s2 + $0x8] sm:$0xff]  ;;  %vm178_vm3 = vcmask 261120   ;;  %v208_v45 = vld [vmem:[%s3750_s3 + $0x10] sm:$0xff]  ;;  %s3042_s21 = smov [#allocation2]  }
   0x6   :  { %2697 = vmatpush3.bf16.msra.mxu1 %v2694_v7  ;;  %59 = vperm.xlu0 %2979, %v54_v6   ;;  %v52_v16 = vand.u32 127, %v51_v15  ;;  %v206_v40 = vld [vmem:[%s3750_s3] sm:$0xff]  ;;  %v207_v41 = vld [vmem:[%s3750_s3 + $0x8] sm:$0xff]  ;;  %v209_v46 = vld [vmem:[%s3750_s3 + $0x18] sm:$0xff]  ;;  %s2095_s1 = sshll.u32 %s3042_s21, 4  ;;  %s2096_s1 = int_to_ptr.vmem [resolvable:$true] %s2095_s1 }
   0x7   :  { %2699 = vmatprep.subr.bf16.mxu1 %v2698_v8  ;;  %v378_v42 = vld [vmem:[%s3752_s5] sm:$0xff]  ;;  %v2710_v43 = vpack.c.bf16 %v207_v41, %v206_v40  ;;  %v379_v44 = vld [vmem:[%s3752_s5 + $0x8] sm:$0xff]  ;;  %v2714_v48 = vpack.c.bf16 %v209_v46, %v208_v45  ;;  %v380_v49 = vld [vmem:[%s3752_s5 + $0x10] sm:$0xff]  ;;  %s3016_s22 = scalar_lea.vmem %s2096_s1, 256  ;;  %p3021_p1 = scmp.lt.s32.totalorder %s2096_s1, %s2096_s1 }
   0x8   :  { %v2726_v47 = vpack.c.bf16 %v379_v44, %v378_v42  ;;  %v381_v50 = vld [vmem:[%s3752_s5 + $0x18] sm:$0xff]  ;;  %v295_v52 = vld [vmem:[%s3751_s4] sm:$0xff]  ;;  %v296_v53 = vld [vmem:[%s3751_s4 + $0x8] sm:$0xff]  ;;  %p3017_p0 = scmp.ne.s32.totalorder %s2096_s1, %s3016_s22  ;;  %p3022_p2 = scmp.lt.s32.totalorder %s3016_s22, %s3016_s22 }
   0x9   :  { %v2730_v51 = vpack.c.bf16 %v381_v50, %v380_v49  ;;  %v2718_v54 = vpack.c.bf16 %v296_v53, %v295_v52  ;;  %v169_v55 = vld [vmem:[%s3761_s14] sm:$0xff]  ;;  %v170_v56 = vld [vmem:[%s3761_s14 + $0x8] sm:$0xff]  ;;  %v297_v2 = vld [vmem:[%s3751_s4 + $0x10] sm:$0xff] }
   0xa   :  { %2701 = vmatpush3.bf16.msra.mxu1 %v2698_v8  ;;  %2727 = vmatprep.subr.bf16.mxu0 %v2726_v47  ;;  %v3212_v57 = vpack.c.bf16 %v170_v56, %v169_v55  ;;  %v298_v3 = vld [vmem:[%s3751_s4 + $0x18] sm:$0xff]  ;;  %v171_v4 = vld [vmem:[%s3761_s14 + $0x10] sm:$0xff]  ;;  %v173_v10 = vld [vmem:[%s3761_s14 + $0x20] sm:$0xff]  ;;  %p3023_p3 = por %p3022_p2, %p3021_p1 }
   0xb   :  { %2703 = vmatprep.subr.bf16.mxu1 %v2702_v11  ;;  %2729 = vmatpush3.bf16.msra.mxu0 %v2726_v47  ;;  %v172_v5 = vld [vmem:[%s3761_s14 + $0x18] sm:$0xff]  ;;  %v2722_v8 = vpack.c.bf16 %v298_v3, %v297_v2  ;;  %v175_v13 = vld [vmem:[%s3761_s14 + $0x30] sm:$0xff]  ;;  %vm3337_vm4 = vmpackc.low %vm178_vm3, %vm178_vm3 }
   0xc   :  { %2731 = vmatprep.subr.bf16.mxu0 %v2730_v51  ;;  %v3229_v9 = vpack.c.bf16 %v172_v5, %v171_v4  ;;  %p3024_p4 = pnand %p3023_p3, %p3017_p0 }
   0xe   :  { %2705 = vmatpush3.bf16.msra.mxu1 %v2702_v11  ;;  %v174_v11 = vld [vmem:[%s3761_s14 + $0x28] sm:$0xff] }
   0xf   :  { %2707 = vmatprep.subr.bf16.mxu1 %v2706_v14  ;;  %2733 = vmatpush3.bf16.msra.mxu0 %v2730_v51  ;;  %v3244_v12 = vpack.c.bf16 %v174_v11, %v173_v10  ;;  %v3366_v11 = vld [vmem:[%s3759_s12 + $0x8] sm:$0xff] }
  0x10   :  { %2759 = vmatprep.subr.bf16.mxu0 %v3212_v57 }
  0x12   :  { %2709 = vmatpush3.bf16.msra.mxu1 %v2706_v14  ;;  %v176_v14 = vld [vmem:[%s3761_s14 + $0x38] sm:$0xff] }
  0x13   :  { %2711 = vmatprep.subr.bf16.mxu1 %v2710_v43 }
  0x81   :  { %v57_v17 = vpop.permute.xlu0 %56 }
  0x82   :  { %vm61_vm1 = vcmp.eq.s32.totalorder %v57_v17, %v52_v16  ;;  %v3259_v17 = vshrl.u32 %v51_v15, 7  ;;  %v3277_v15 = vld [vmem:[%s3760_s13 + $0x8] sm:$0xff] }
  0x83   :  { %v2106_v19 = vsel %vm61_vm1, 1.0, %v3041_v18 }
  0x84   :  { %2386 = vmatprep.mubr.msk.f32.mxu1 %vm77_vm0, %v2106_v19  ;;  %v3265_v19 = vld [vmem:[%s3756_s9] sm:$0xff] }
  0x85   :  { %v60_v20 = vpop.permute.xlu0 %59 }
  0x86   :  { %vm62_vm2 = vcmp.eq.s32.totalorder %v60_v20, %v52_v16  ;;  %v3254_v16 = vpack.c.bf16 %v176_v14, %v175_v13  ;;  %v212_v20 = vsub.s32 0, %v3259_v17 }
  0x87   :  { %v2107_v21 = vsel %vm62_vm2, 1.0, %v3041_v18  ;;  %v384_v18 = vsub.s32 2, %v3259_v17 }
  0x88   :  { %2387 = vmatmul.mubr.msk.f32.vlgmr.msra.gmra.mrb[0].mxu1 %vm77_vm0, %v2107_v21 }
  0x89   :  { %2713 = vmatpush3.bf16.msra.mxu1 %v2710_v43  ;;  %v385_v21 = vrot.slane %v3265_v19, %v384_v18 }
  0x8a   :  { %2715 = vmatprep.subr.bf16.mxu1 %v2714_v48 }
  0x8d   :  { %2717 = vmatpush3.bf16.msra.mxu1 %v2714_v48 }
  0x8e   :  { %2719 = vmatprep.subr.bf16.mxu1 %v2718_v54 }
 0x15b   :  { %v2388_v23 = vpop.f32.mrb[0].mxu1 }
 0x15c   :  { %v150_v25 = vpop.f32.mrb[1].mxu1  ;;  %v3166_v27 = vadd.f32 %v2388_v23, %v76_v24  ;;  %v3282_v23 = vld [vmem:[%s3760_s13 + $0x18] sm:$0xff] }
 0x15d   :  { %v3164_v26 = vadd.f32 %v150_v25, %v75_v22  ;;  %v213_v22 = vrot.slane %v3265_v19, %v212_v20 }
 0x15e   :  { %v182_v29 = vsel %vm178_vm3, %v3166_v27, 0.0 }
 0x15f   :  { %v179_v28 = vsel %vm178_vm3, %v3164_v26, 0.0 }
 0x160   :  { %180 = vadd.xlane.f32.xlu1 %v179_v28  ;;  %v3287_v28 = vld [vmem:[%s3760_s13 + $0x28] sm:$0xff] }
 0x164   :  { %183 = vadd.xlane.f32.xlu1 %v182_v29  ;;  %v3292_v29 = vld [vmem:[%s3760_s13 + $0x38] sm:$0xff] }
 0x1ed   :  { %v181_v30 = vpop.xlane.xlu1 %180 }
 0x1ee   :  { %v186_v31 = vmul.f32 0.03125, %v181_v30  ;;  %v3297_v30 = vld [vmem:[%s3760_s13] sm:$0xff] }
 0x1f0   :  { %v188_v32 = vsub.f32 %v3164_v26, %v186_v31 }
 0x1f1   :  { %v184_v33 = vpop.xlane.xlu1 %183 }
 0x1f2   :  { %v187_v34 = vmul.f32 0.03125, %v184_v33  ;;  %v190_v35 = vmul.f32 %v188_v32, %v188_v32 }
 0x1f4   :  { %v189_v36 = vsub.f32 %v3166_v27, %v187_v34  ;;  %v192_v37 = vsel %vm178_vm3, %v190_v35, 0.0  ;;  %v301_v34 = vsub.s32 1, %v3259_v17  ;;  %v3303_v35 = vld [vmem:[%s3760_s13 + $0x10] sm:$0xff] }
 0x1f5   :  { %193 = vadd.xlane.f32.xlu0 %v192_v37  ;;  %v3313_v37 = vld [vmem:[%s3760_s13 + $0x30] sm:$0xff] }
 0x1f6   :  { %v191_v38 = vmul.f32 %v189_v36, %v189_v36  ;;  %v302_v48 = vrot.slane %v3265_v19, %v301_v34 }
 0x1f8   :  { %v195_v39 = vsel %vm178_vm3, %v191_v38, 0.0 }
 0x1f9   :  { %196 = vadd.xlane.f32.xlu1 %v195_v39 }
 0x282   :  { %v194_v58 = vpop.xlane.xlu0 %193 }
 0x283   :  { %v198_v59 = vmul.f32 0.03125, %v194_v58 }
 0x285   :  { %v200_v60 = vadd.f32 1e-05, %v198_v59 }
 0x286   :  { %v197_v61 = vpop.xlane.xlu1 %196 }
 0x287   :  { %2980 = vrsqrt.f32 %v200_v60  ;;  %v199_v62 = vmul.f32 0.03125, %v197_v61 }
 0x289   :  { %v201_v63 = vadd.f32 1e-05, %v199_v62 }
 0x28b   :  { %2982 = vrsqrt.f32 %v201_v63 }
 0x291   :  { %v2981_v0 = vpop.eup %2980 }
 0x292   :  { %v204_v1 = vmul.f32 %v2981_v0, %v188_v32 }
 0x294   :  { %2397 = vmatprep.mubr.msk.f32.mxu1 %vm178_vm3, %v204_v1  ;;  %2419 = vmatprep.mubr.msk.f32.mxu0 %vm178_vm3, %v204_v1 }
 0x295   :  { %v2983_v6 = vpop.eup %2982 }
 0x296   :  { %v205_v7 = vmul.f32 %v2983_v6, %v189_v36  ;;  %v3308_v36 = vld [vmem:[%s3760_s13 + $0x20] sm:$0xff] }
 0x298   :  { %2398 = vmatmul.mubr.msk.f32.vlgmr.msra.gmra.mrb[2].mxu1 %vm178_vm3, %v205_v7  ;;  %2420 = vmatmul.mubr.msk.f32.vlgmr.msra.gmra.mrb[0].mxu0 %vm178_vm3, %v205_v7 }
 0x299   :  { %2721 = vmatpush3.bf16.msra.mxu1 %v2718_v54  ;;  %2408 = vmatprep.mubr.msk.f32.mxu1 %vm178_vm3, %v204_v1 }
 0x29a   :  { %2723 = vmatprep.subr.bf16.mxu1 %v2722_v8  ;;  %2761 = vmatpush3.bf16.msra.mxu0 %v3212_v57 }
 0x29b   :  { %2763 = vmatprep.subr.bf16.mxu0 %v3229_v9 }
 0x29d   :  { %2725 = vmatpush3.bf16.msra.mxu1 %v2722_v8  ;;  %v3361_v8 = vld [vmem:[%s3759_s12] sm:$0xff] }
 0x29e   :  { %2765 = vmatpush3.bf16.msra.mxu0 %v3229_v9 }
 0x29f   :  { %2767 = vmatprep.subr.bf16.mxu0 %v3244_v12 }
 0x2a0   :  { %2409 = vmatmul.mubr.msk.f32.vlgmr.msra.gmra.mrb[4].mxu1 %vm178_vm3, %v205_v7 }
 0x2a2   :  { %2769 = vmatpush3.bf16.msra.mxu0 %v3244_v12 }
 0x2a3   :  { %2771 = vmatprep.subr.bf16.mxu0 %v3254_v16 }
 0x2a6   :  { %2773 = vmatpush3.bf16.msra.mxu0 %v3254_v16 }
 0x36b   :  { %v2399_v24 = vpop.f32.mrb[2].mxu1  ;;  %v2421_v25 = vpop.f32.mrb[0].mxu0 }
 0x36c   :  { %v458_v31 = vadd.f32 %v2421_v25, %v385_v21  ;;  %v286_v32 = vpop.f32.mrb[3].mxu1  ;;  %v452_v33 = vpop.f32.mrb[1].mxu0  ;;  %v292_v7 = vadd.f32 %v2399_v24, %v213_v22 }
 0x36d   :  { %v287_v38 = vadd.f32 %v286_v32, %v213_v22  ;;  %v453_v39 = vadd.f32 %v452_v33, %v385_v21 }
 0x36e   :  { %v470_v40 = vmul.f32 %v458_v31, %v3277_v15  ;;  %v472_v41 = vmul.f32 %v458_v31, %v3282_v23  ;;  %v474_v42 = vmul.f32 %v458_v31, %v3287_v28  ;;  %v476_v43 = vmul.f32 %v458_v31, %v3292_v29 }
 0x36f   :  { %2438 = vmatprep.mubr.msk.f32.mxu1 %vm178_vm3, %v287_v38  ;;  %v469_v44 = vmul.f32 %v453_v39, %v3297_v30  ;;  %v471_v45 = vmul.f32 %v453_v39, %v3303_v35  ;;  %v473_v46 = vmul.f32 %v453_v39, %v3308_v36  ;;  %v475_v47 = vmul.f32 %v453_v39, %v3313_v37 }
 0x371   :  { %v2774_v49 = vpack.c.bf16 %v470_v40, %v469_v44  ;;  %v2778_v50 = vpack.c.bf16 %v472_v41, %v471_v45  ;;  %v2782_v51 = vpack.c.bf16 %v474_v42, %v473_v46  ;;  %v2786_v52 = vpack.c.bf16 %v476_v43, %v475_v47  ;;  %v762_v42 = vld [vmem:[%s3753_s6] sm:$0xff]  ;;  %v763_v43 = vld [vmem:[%s3753_s6 + $0x8] sm:$0xff]  ;;  %v764_v44 = vld [vmem:[%s3753_s6 + $0x10] sm:$0xff] }
 0x372   :  { %v2790_v45 = vpack.c.bf16 %v763_v43, %v762_v42  ;;  %v765_v46 = vld [vmem:[%s3753_s6 + $0x18] sm:$0xff]  ;;  %v974_v42 = vld [vmem:[%s3755_s8 + $0x10] sm:$0xff] }
 0x373   :  { %v2410_v53 = vpop.f32.mrb[4].mxu1  ;;  %2775 = vmatprep.subr.bf16.mxu0 %v2774_v49  ;;  %v2794_v47 = vpack.c.bf16 %v765_v46, %v764_v44  ;;  %v975_v44 = vld [vmem:[%s3755_s8 + $0x18] sm:$0xff]  ;;  %v976_v46 = vld [vmem:[%s3755_s8 + $0x20] sm:$0xff] }
 0x374   :  { %v375_v54 = vadd.f32 %v2410_v53, %v302_v48  ;;  %v369_v55 = vpop.f32.mrb[5].mxu1 }
 0x375   :  { %v370_v56 = vadd.f32 %v369_v55, %v302_v48 }
 0x376   :  { %v462_v58 = vmul.f32 %v375_v54, %v3277_v15  ;;  %v464_v59 = vmul.f32 %v375_v54, %v3282_v23  ;;  %v466_v60 = vmul.f32 %v375_v54, %v3287_v28  ;;  %v468_v61 = vmul.f32 %v375_v54, %v3292_v29 }
 0x377   :  { %v461_v62 = vmul.f32 %v370_v56, %v3297_v30  ;;  %v463_v63 = vmul.f32 %v370_v56, %v3303_v35  ;;  %v465_v0 = vmul.f32 %v370_v56, %v3308_v36  ;;  %v467_v1 = vmul.f32 %v370_v56, %v3313_v37 }
 0x379   :  { %v2734_v3 = vpack.c.bf16 %v462_v58, %v461_v62  ;;  %v2740_v4 = vpack.c.bf16 %v464_v59, %v463_v63  ;;  %v2746_v5 = vpack.c.bf16 %v466_v60, %v465_v0  ;;  %v2752_v6 = vpack.c.bf16 %v468_v61, %v467_v1 }
 0x37a   :  { %v851_v59 = vsub.s32 3, %v3259_v17 }
 0x37b   :  { %2736 = vmatprep.subr.msk.bf16.mxu1 %vm3337_vm4, %v2734_v3 }
 0x37c   :  { %2739 = vmatpush3.bf16.xpose.msk.msra.mxu1 %vm3337_vm4, %v2734_v3  ;;  %v852_v61 = vrot.slane %v3265_v19, %v851_v59 }
 0x37d   :  { %2742 = vmatprep.subr.msk.bf16.mxu1 %vm3337_vm4, %v2740_v4 }
 0x384   :  { %2745 = vmatpush3.bf16.xpose.msk.msra.mxu1 %vm3337_vm4, %v2740_v4 }
 0x385   :  { %2748 = vmatprep.subr.msk.bf16.mxu1 %vm3337_vm4, %v2746_v5 }
 0x38c   :  { %2751 = vmatpush3.bf16.xpose.msk.msra.mxu1 %vm3337_vm4, %v2746_v5 }
 0x38d   :  { %2754 = vmatprep.subr.msk.bf16.mxu1 %vm3337_vm4, %v2752_v6 }
 0x394   :  { %2757 = vmatpush3.bf16.xpose.msk.msra.mxu1 %vm3337_vm4, %v2752_v6 }
 0x395   :  { %2791 = vmatprep.subr.bf16.mxu1 %v2790_v45 }
 0x39b   :  { %2439 = vmatmul.mubr.msk.f32.vlgmr.msra.gmra.mrb[6].mxu1 %vm178_vm3, %v292_v7 }
 0x39c   :  { %2793 = vmatpush3.bf16.msra.mxu1 %v2790_v45  ;;  %v2810_v45 = vpack.c.bf16 %v975_v44, %v974_v42 }
 0x39d   :  { %2795 = vmatprep.subr.bf16.mxu1 %v2794_v47 }
 0x3a0   :  { %2797 = vmatpush3.bf16.msra.mxu1 %v2794_v47  ;;  %v977_v47 = vld [vmem:[%s3755_s8 + $0x28] sm:$0xff] }
 0x46e   :  { %v2440_v10 = vpop.f32.mrb[6].mxu1 }
 0x46f   :  { %v573_v13 = vpop.f32.mrb[7].mxu1  ;;  %v579_v21 = vadd.f32 %v2440_v10, %v3366_v11 }
 0x470   :  { %v574_v14 = vadd.f32 %v573_v13, %v3361_v8 }
 0x471   :  { %v585_v24 = vsel %vm77_vm0, %v579_v21, -inf }
 0x472   :  { %v582_v22 = vsel %vm77_vm0, %v574_v14, -inf }
 0x473   :  { %583 = vmax.xlane.f32.xlu1 %v582_v22 }
 0x477   :  { %586 = vmax.xlane.f32.xlu1 %v585_v24 }
 0x500   :  { %v584_v25 = vpop.xlane.xlu1 %583 }
 0x501   :  { %v588_v31 = vsub.f32 %v574_v14, %v584_v25  ;;  %v881_v25 = vld [vmem:[%s3754_s7] sm:$0xff] }
 0x503   :  { %v590_v32 = vmul.f32 1.442695, %v588_v31  ;;  %v882_v31 = vld [vmem:[%s3754_s7 + $0x8] sm:$0xff] }
 0x504   :  { %v587_v33 = vpop.xlane.xlu1 %586 }
 0x505   :  { %2984 = vpow2.f32 %v590_v32  ;;  %v589_v38 = vsub.f32 %v579_v21, %v587_v33  ;;  %v883_v32 = vld [vmem:[%s3754_s7 + $0x10] sm:$0xff]  ;;  %v2798_v33 = vpack.c.bf16 %v882_v31, %v881_v25 }
 0x507   :  { %v592_v39 = vmul.f32 1.442695, %v589_v38  ;;  %v884_v38 = vld [vmem:[%s3754_s7 + $0x18] sm:$0xff] }
 0x509   :  { %2986 = vpow2.f32 %v592_v39  ;;  %v2802_v39 = vpack.c.bf16 %v884_v38, %v883_v32 }
 0x50f   :  { %v2985_v40 = vpop.eup %2984 }
 0x510   :  { %2457 = vmatprep.mubr.msk.f32.mxu0 %vm77_vm0, %v2985_v40 }
 0x513   :  { %v2987_v41 = vpop.eup %2986 }
 0x514   :  { %2458 = vmatmul.mubr.msk.f32.vlgmr.msra.gmra.mrb[2].mxu0 %vm77_vm0, %v2987_v41 }
 0x515   :  { %2777 = vmatpush3.bf16.msra.mxu0 %v2774_v49 }
 0x516   :  { %2779 = vmatprep.subr.bf16.mxu0 %v2778_v50 }
 0x519   :  { %2781 = vmatpush3.bf16.msra.mxu0 %v2778_v50 }
 0x51a   :  { %2783 = vmatprep.subr.bf16.mxu0 %v2782_v51 }
 0x51d   :  { %2785 = vmatpush3.bf16.msra.mxu0 %v2782_v51 }
 0x51e   :  { %2787 = vmatprep.subr.bf16.mxu0 %v2786_v52 }
 0x521   :  { %2789 = vmatpush3.bf16.msra.mxu0 %v2786_v52 }
 0x522   :  { %2799 = vmatprep.subr.bf16.mxu0 %v2798_v33 }
 0x5e7   :  { %v2459_v48 = vpop.f32.mrb[2].mxu0 }
 0x5e8   :  { %v676_v49 = vmax.f32 %v2459_v48, 1e-30  ;;  %v666_v50 = vpop.f32.mrb[3].mxu0  ;;  %v2814_v48 = vpack.c.bf16 %v977_v47, %v976_v46 }
 0x5e9   :  { %v675_v51 = vmax.f32 %v666_v50, 1e-30  ;;  %v979_v50 = vld [vmem:[%s3755_s8 + $0x38] sm:$0xff] }
 0x5ea   :  { %2988 = vrcp.f32 %v676_v49  ;;  %v978_v49 = vld [vmem:[%s3755_s8 + $0x30] sm:$0xff] }
 0x5eb   :  { %2990 = vrcp.f32 %v675_v51  ;;  %v2818_v51 = vpack.c.bf16 %v979_v50, %v978_v49 }
 0x5f4   :  { %v2989_v52 = vpop.eup %2988 }
 0x5f5   :  { %v2991_v53 = vpop.eup %2990  ;;  %v680_v55 = vmul.f32 %v2989_v52, %v2987_v41  ;;  %v973_v41 = vld [vmem:[%s3755_s8 + $0x8] sm:$0xff]  ;;  %v980_v52 = vld [vmem:[%s3755_s8 + $0x40] sm:$0xff] }
 0x5f6   :  { %v679_v54 = vmul.f32 %v2991_v53, %v2985_v40  ;;  %v972_v40 = vld [vmem:[%s3755_s8] sm:$0xff]  ;;  %v981_v53 = vld [vmem:[%s3755_s8 + $0x48] sm:$0xff] }
 0x5f7   :  { %v2806_v43 = vpack.c.bf16 %v973_v41, %v972_v40  ;;  %v1067_v41 = vsub.s32 5, %v3259_v17 }
 0x5f8   :  { %2476 = vmatprep.mubr.msk.f32.mxu0 %vm77_vm0, %v679_v54  ;;  %v2822_v54 = vpack.c.bf16 %v981_v53, %v980_v52 }
 0x5f9   :  { %2477 = vmatmul.mubr.msk.f32.vlgmr.msra.gmra.mrb[4].mxu0 %vm77_vm0, %v680_v55  ;;  %2807 = vmatprep.subr.bf16.mxu1 %v2806_v43  ;;  %v982_v55 = vld [vmem:[%s3755_s8 + $0x50] sm:$0xff]  ;;  %v1068_v42 = vrot.slane %v3265_v19, %v1067_v41 }
 0x5fa   :  { %2801 = vmatpush3.bf16.msra.mxu0 %v2798_v33 }
 0x5fb   :  { %2803 = vmatprep.subr.bf16.mxu0 %v2802_v39 }
 0x5fe   :  { %2805 = vmatpush3.bf16.msra.mxu0 %v2802_v39 }
 0x6cc   :  { %v2478_v56 = vpop.f32.mrb[4].mxu0 }
 0x6cd   :  { %v753_v58 = vpop.f32.mrb[5].mxu0 }
 0x6ce   :  { %2487 = vmatprep.mubr.msk.f32.mxu1 %vm178_vm3, %v753_v58 }
 0x6cf   :  { %2488 = vmatmul.mubr.msk.f32.vlgmr.msra.gmra.mrb[8].mxu1 %vm178_vm3, %v2478_v56  ;;  %v983_v56 = vld [vmem:[%s3755_s8 + $0x58] sm:$0xff] }
 0x6d0   :  { %2809 = vmatpush3.bf16.msra.mxu1 %v2806_v43  ;;  %v2826_v58 = vpack.c.bf16 %v983_v56, %v982_v55  ;;  %v2136_v55 = vld [vmem:[%s3750_s3 + $0x28] sm:$0xff]  ;;  %v2137_v56 = vld [vmem:[%s3750_s3 + $0x30] sm:$0xff] }
 0x6d1   :  { %2811 = vmatprep.subr.bf16.mxu1 %v2810_v45 }
 0x6d4   :  { %2813 = vmatpush3.bf16.msra.mxu1 %v2810_v45 }
 0x6d5   :  { %2815 = vmatprep.subr.bf16.mxu1 %v2814_v48 }
 0x6d8   :  { %2817 = vmatpush3.bf16.msra.mxu1 %v2814_v48 }
 0x6d9   :  { %2819 = vmatprep.subr.bf16.mxu1 %v2818_v51 }
 0x6dc   :  { %2821 = vmatpush3.bf16.msra.mxu1 %v2818_v51 }
 0x6dd   :  { %2823 = vmatprep.subr.bf16.mxu1 %v2822_v54 }
 0x6e0   :  { %2825 = vmatpush3.bf16.msra.mxu1 %v2822_v54  ;;  %v2135_v54 = vld [vmem:[%s3750_s3 + $0x20] sm:$0xff] }
 0x6e1   :  { %2827 = vmatprep.subr.bf16.mxu1 %v2826_v58 }
 0x6e4   :  { %2829 = vmatpush3.bf16.msra.mxu1 %v2826_v58  ;;  %v2838_v58 = vpack.c.bf16 %v2136_v55, %v2135_v54 }
 0x6e6   :  { %2839 = vmatprep.subr.bf16.mxu0 %v2838_v58 }
 0x7a2   :  { %v2489_v60 = vpop.f32.mrb[8].mxu1 }
 0x7a3   :  { %v838_v62 = vpop.f32.mrb[9].mxu1  ;;  %v848_v63 = vadd.f32 %v2489_v60, %v3166_v27  ;;  %v984_v60 = vld [vmem:[%s3755_s8 + $0x60] sm:$0xff] }
 0x7a4   :  { %v847_v0 = vadd.f32 %v838_v62, %v3164_v26 }
 0x7a5   :  { %v3398_v3 = vadd.f32 %v852_v61, %v848_v63 }
 0x7a6   :  { %v3396_v1 = vadd.f32 %v852_v61, %v847_v0  ;;  %v985_v61 = vld [vmem:[%s3755_s8 + $0x68] sm:$0xff] }
 0x7a7   :  { %v858_v5 = vsel %vm178_vm3, %v3398_v3, 0.0  ;;  %v2830_v62 = vpack.c.bf16 %v985_v61, %v984_v60  ;;  %v2138_v60 = vld [vmem:[%s3750_s3 + $0x38] sm:$0xff] }
 0x7a8   :  { %v855_v4 = vsel %vm178_vm3, %v3396_v1, 0.0  ;;  %v2842_v61 = vpack.c.bf16 %v2138_v60, %v2137_v56 }
 0x7a9   :  { %856 = vadd.xlane.f32.xlu1 %v855_v4  ;;  %2831 = vmatprep.subr.bf16.mxu1 %v2830_v62 }
 0x7aa   :  { %2833 = vmatpush3.bf16.msra.mxu1 %v2830_v62  ;;  %v2141_v62 = vld [vmem:[%s3751_s4 + $0x20] sm:$0xff] }
 0x7ad   :  { %859 = vadd.xlane.f32.xlu1 %v858_v5 }
 0x836   :  { %v857_v6 = vpop.xlane.xlu1 %856 }
 0x837   :  { %v861_v7 = vmul.f32 0.03125, %v857_v6 }
 0x839   :  { %v3405_v10 = vsub.f32 %v3396_v1, %v861_v7 }
 0x83a   :  { %v860_v27 = vpop.xlane.xlu1 %859 }
 0x83b   :  { %v862_v13 = vmul.f32 0.03125, %v860_v27  ;;  %v865_v26 = vmul.f32 %v3405_v10, %v3405_v10 }
 0x83d   :  { %v3410_v14 = vsub.f32 %v3398_v3, %v862_v13  ;;  %v867_v21 = vsel %vm178_vm3, %v865_v26, 0.0 }
 0x83e   :  { %868 = vadd.xlane.f32.xlu1 %v867_v21 }
 0x83f   :  { %v866_v22 = vmul.f32 %v3410_v14, %v3410_v14 }
 0x841   :  { %v870_v24 = vsel %vm178_vm3, %v866_v22, 0.0  ;;  %v986_v22 = vld [vmem:[%s3755_s8 + $0x70] sm:$0xff] }
 0x842   :  { %871 = vadd.xlane.f32.xlu1 %v870_v24  ;;  %v987_v24 = vld [vmem:[%s3755_s8 + $0x78] sm:$0xff] }
 0x843   :  { %v2834_v25 = vpack.c.bf16 %v987_v24, %v986_v22  ;;  %v2144_v22 = vld [vmem:[%s3751_s4 + $0x38] sm:$0xff] }
 0x845   :  { %2835 = vmatprep.subr.bf16.mxu1 %v2834_v25 }
 0x846   :  { %2837 = vmatpush3.bf16.msra.mxu1 %v2834_v25 }
 0x847   :  { %2887 = vmatprep.subr.bf16.mxu1 %v3212_v57 }
 0x8cb   :  { %v869_v63 = vpop.xlane.xlu1 %868 }
 0x8cc   :  { %v873_v0 = vmul.f32 0.03125, %v869_v63  ;;  %v2142_v63 = vld [vmem:[%s3751_s4 + $0x28] sm:$0xff] }
 0x8ce   :  { %v875_v4 = vadd.f32 1e-05, %v873_v0  ;;  %v2846_v0 = vpack.c.bf16 %v2142_v63, %v2141_v62 }
 0x8cf   :  { %v872_v5 = vpop.xlane.xlu1 %871 }
 0x8d0   :  { %2992 = vrsqrt.f32 %v875_v4  ;;  %v874_v6 = vmul.f32 0.03125, %v872_v5 }
 0x8d2   :  { %v876_v7 = vadd.f32 1e-05, %v874_v6 }
 0x8d4   :  { %2994 = vrsqrt.f32 %v876_v7 }
 0x8da   :  { %v2993_v27 = vpop.eup %2992 }
 0x8db   :  { %v879_v13 = vmul.f32 %v2993_v27, %v3405_v10  ;;  %v887_v10 = vsub.s32 4, %v3259_v17 }
 0x8dd   :  { %2498 = vmatprep.mubr.msk.f32.mxu0 %vm178_vm3, %v879_v13 }
 0x8de   :  { %v2995_v26 = vpop.eup %2994 }
 0x8df   :  { %v880_v21 = vmul.f32 %v2995_v26, %v3410_v14  ;;  %v888_v14 = vrot.slane %v3265_v19, %v887_v10 }
 0x8e1   :  { %2499 = vmatmul.mubr.msk.f32.vlgmr.msra.gmra.mrb[6].mxu0 %vm178_vm3, %v880_v21  ;;  %v2143_v21 = vld [vmem:[%s3751_s4 + $0x30] sm:$0xff] }
 0x8e2   :  { %2841 = vmatpush3.bf16.msra.mxu0 %v2838_v58 }
 0x8e3   :  { %2843 = vmatprep.subr.bf16.mxu0 %v2842_v61 }
 0x8e6   :  { %2845 = vmatpush3.bf16.msra.mxu0 %v2842_v61 }
 0x8e7   :  { %2847 = vmatprep.subr.bf16.mxu0 %v2846_v0 }
 0x9b4   :  { %v2500_v31 = vpop.f32.mrb[6].mxu0 }
 0x9b5   :  { %v967_v32 = vadd.f32 %v2500_v31, %v888_v14  ;;  %v961_v33 = vpop.f32.mrb[7].mxu0  ;;  %v2850_v31 = vpack.c.bf16 %v2144_v22, %v2143_v21 }
 0x9b6   :  { %v962_v38 = vadd.f32 %v961_v33, %v888_v14  ;;  %v2148_v33 = vld [vmem:[%s3752_s5 + $0x28] sm:$0xff] }
 0x9b7   :  { %v971_v40 = vmax.f32 %v967_v32, 0.0  ;;  %v2147_v32 = vld [vmem:[%s3752_s5 + $0x20] sm:$0xff] }
 0x9b8   :  { %v970_v39 = vmax.f32 %v962_v38, 0.0  ;;  %v2854_v38 = vpack.c.bf16 %v2148_v33, %v2147_v32 }
 0x9ba   :  { %2533 = vmatprep.mubr.f32.mxu1 %v970_v39  ;;  %v2149_v39 = vld [vmem:[%s3752_s5 + $0x30] sm:$0xff] }
 0x9bb   :  { %2534 = vmatmul.mubr.f32.vlgmr.msra.gmra.mrb[10].mxu1 %v971_v40  ;;  %v2150_v40 = vld [vmem:[%s3752_s5 + $0x38] sm:$0xff] }
 0x9bc   :  { %2889 = vmatpush3.bf16.msra.mxu1 %v3212_v57 }
 0x9bd   :  { %2891 = vmatprep.subr.bf16.mxu1 %v3229_v9 }
 0x9c0   :  { %2893 = vmatpush3.bf16.msra.mxu1 %v3229_v9 }
 0x9c1   :  { %2895 = vmatprep.subr.bf16.mxu1 %v3244_v12 }
 0x9c4   :  { %2897 = vmatpush3.bf16.msra.mxu1 %v3244_v12 }
 0x9c5   :  { %2899 = vmatprep.subr.bf16.mxu1 %v3254_v16 }
 0x9c8   :  { %2901 = vmatpush3.bf16.msra.mxu1 %v3254_v16 }
 0xa8e   :  { %v2535_v43 = vpop.f32.mrb[10].mxu1 }
 0xa8f   :  { %v1064_v57 = vadd.f32 %v2535_v43, %v3398_v3  ;;  %v1054_v44 = vpop.f32.mrb[11].mxu1  ;;  %v3555_v43 = vld [vmem:[%s3756_s9 + $0x8] sm:$0xff] }
 0xa90   :  { %v1063_v9 = vadd.f32 %v1054_v44, %v3396_v1  ;;  %v1281_v54 = vrot.slane %v3555_v43, %v384_v18 }
 0xa91   :  { %v3498_v45 = vadd.f32 %v1068_v42, %v1064_v57  ;;  %v1107_v57 = vrot.slane %v3555_v43, %v212_v20 }
 0xa92   :  { %v3500_v46 = vadd.f32 %v1068_v42, %v1063_v9  ;;  %v2858_v42 = vpack.c.bf16 %v2150_v40, %v2149_v39  ;;  %v2169_v40 = vld [vmem:[%s3753_s6 + $0x30] sm:$0xff] }
 0xa93   :  { %v1076_v12 = vsel %vm178_vm3, %v3498_v45, 0.0 }
 0xa94   :  { %1077 = vadd.xlane.f32.xlu0 %v1076_v12  ;;  %v1073_v16 = vsel %vm178_vm3, %v3500_v46, 0.0 }
 0xa95   :  { %1074 = vadd.xlane.f32.xlu1 %v1073_v16  ;;  %v1197_v16 = vrot.slane %v3555_v43, %v301_v34 }
 0xb21   :  { %v1078_v47 = vpop.xlane.xlu0 %1077 }
 0xb22   :  { %v1080_v19 = vmul.f32 0.03125, %v1078_v47  ;;  %v1075_v48 = vpop.xlane.xlu1 %1074 }
 0xb23   :  { %v1079_v49 = vmul.f32 0.03125, %v1075_v48 }
 0xb24   :  { %v1082_v3 = vsub.f32 %v3498_v45, %v1080_v19 }
 0xb25   :  { %v1081_v1 = vsub.f32 %v3500_v46, %v1079_v49 }
 0xb26   :  { %v1084_v50 = vmul.f32 %v1082_v3, %v1082_v3 }
 0xb27   :  { %v1083_v51 = vmul.f32 %v1081_v1, %v1081_v1 }
 0xb28   :  { %v1088_v52 = vsel %vm178_vm3, %v1084_v50, 0.0 }
 0xb29   :  { %1089 = vadd.xlane.f32.xlu0 %v1088_v52  ;;  %v1085_v53 = vsel %vm178_vm3, %v1083_v51, 0.0 }
 0xb2a   :  { %1086 = vadd.xlane.f32.xlu1 %v1085_v53 }
 0xbb6   :  { %v1090_v4 = vpop.xlane.xlu0 %1089 }
 0xbb7   :  { %v1092_v5 = vmul.f32 0.03125, %v1090_v4  ;;  %v1087_v6 = vpop.xlane.xlu1 %1086 }
 0xbb8   :  { %v1091_v7 = vmul.f32 0.03125, %v1087_v6 }
 0xbb9   :  { %v1094_v27 = vadd.f32 1e-05, %v1092_v5 }
 0xbba   :  { %v1093_v13 = vadd.f32 1e-05, %v1091_v7 }
 0xbbb   :  { %2996 = vrsqrt.f32 %v1094_v27 }
 0xbbc   :  { %2998 = vrsqrt.f32 %v1093_v13 }
 0xbc5   :  { %v2997_v26 = vpop.eup %2996 }
 0xbc6   :  { %v2999_v24 = vpop.eup %2998  ;;  %v1098_v14 = vmul.f32 %v2997_v26, %v1082_v3 }
 0xbc7   :  { %v1097_v25 = vmul.f32 %v2999_v24, %v1081_v1 }
 0xbc9   :  { %2544 = vmatprep.mubr.msk.f32.mxu0 %vm178_vm3, %v1097_v25 }
 0xbca   :  { %2545 = vmatmul.mubr.msk.f32.vlgmr.msra.gmra.mrb[8].mxu0 %vm178_vm3, %v1098_v14 }
 0xbcb   :  { %2849 = vmatpush3.bf16.msra.mxu0 %v2846_v0  ;;  %2555 = vmatprep.mubr.msk.f32.mxu0 %vm178_vm3, %v1097_v25 }
 0xbcc   :  { %2851 = vmatprep.subr.bf16.mxu0 %v2850_v31 }
 0xbcf   :  { %2853 = vmatpush3.bf16.msra.mxu0 %v2850_v31 }
 0xbd0   :  { %2855 = vmatprep.subr.bf16.mxu0 %v2854_v38 }
 0xbd2   :  { %2556 = vmatmul.mubr.msk.f32.vlgmr.msra.gmra.mrb[10].mxu0 %vm178_vm3, %v1098_v14 }
 0xbd3   :  { %2857 = vmatpush3.bf16.msra.mxu0 %v2854_v38  ;;  %2566 = vmatprep.mubr.msk.f32.mxu0 %vm178_vm3, %v1097_v25 }
 0xbd4   :  { %2859 = vmatprep.subr.bf16.mxu0 %v2858_v42 }
 0xbd7   :  { %2861 = vmatpush3.bf16.msra.mxu0 %v2858_v42 }
 0xbda   :  { %2567 = vmatmul.mubr.msk.f32.vlgmr.msra.gmra.mrb[12].mxu0 %vm178_vm3, %v1098_v14 }
 0xc9d   :  { %v2546_v44 = vpop.f32.mrb[8].mxu0 }
 0xc9e   :  { %v1180_v9 = vpop.f32.mrb[9].mxu0 }
 0xc9f   :  { %v1181_v12 = vadd.f32 %v1180_v9, %v1107_v57 }
 0xca1   :  { %2585 = vmatprep.mubr.msk.f32.mxu0 %vm178_vm3, %v1181_v12 }
 0xca5   :  { %v2557_v47 = vpop.f32.mrb[10].mxu0 }
 0xca6   :  { %v1270_v19 = vadd.f32 %v2557_v47, %v1197_v16  ;;  %v1264_v48 = vpop.f32.mrb[11].mxu0 }
 0xca7   :  { %v1265_v49 = vadd.f32 %v1264_v48, %v1197_v16 }
 0xca8   :  { %v1358_v3 = vmul.f32 %v1270_v19, %v3277_v15  ;;  %v1360_v1 = vmul.f32 %v1270_v19, %v3282_v23  ;;  %v1362_v50 = vmul.f32 %v1270_v19, %v3287_v28  ;;  %v1364_v20 = vmul.f32 %v1270_v19, %v3292_v29 }
 0xca9   :  { %v1357_v51 = vmul.f32 %v1265_v49, %v3297_v30  ;;  %v1359_v52 = vmul.f32 %v1265_v49, %v3303_v35  ;;  %v1361_v53 = vmul.f32 %v1265_v49, %v3308_v36  ;;  %v1363_v34 = vmul.f32 %v1265_v49, %v3313_v37 }
 0xcab   :  { %v2862_v55 = vpack.c.bf16 %v1358_v3, %v1357_v51  ;;  %v2868_v56 = vpack.c.bf16 %v1360_v1, %v1359_v52  ;;  %v2874_v58 = vpack.c.bf16 %v1362_v50, %v1361_v53  ;;  %v2880_v60 = vpack.c.bf16 %v1364_v20, %v1363_v34 }
 0xcac   :  { %v1749_v20 = vrot.slane %v3555_v43, %v851_v59 }
 0xcad   :  { %v2568_v61 = vpop.f32.mrb[12].mxu0  ;;  %2864 = vmatprep.subr.msk.bf16.mxu0 %vm3337_vm4, %v2862_v55 }
 0xcae   :  { %v1354_v62 = vadd.f32 %v2568_v61, %v1281_v54  ;;  %v1348_v63 = vpop.f32.mrb[13].mxu0  ;;  %2867 = vmatpush3.bf16.xpose.msk.msra.mxu0 %vm3337_vm4, %v2862_v55 }
 0xcaf   :  { %v1349_v0 = vadd.f32 %v1348_v63, %v1281_v54  ;;  %2870 = vmatprep.subr.msk.bf16.mxu0 %vm3337_vm4, %v2868_v56 }
 0xcb0   :  { %v1366_v4 = vmul.f32 %v1354_v62, %v3277_v15  ;;  %v1368_v18 = vmul.f32 %v1354_v62, %v3282_v23  ;;  %v1370_v5 = vmul.f32 %v1354_v62, %v3287_v28  ;;  %v1372_v6 = vmul.f32 %v1354_v62, %v3292_v29 }
 0xcb1   :  { %v1365_v7 = vmul.f32 %v1349_v0, %v3297_v30  ;;  %v1367_v27 = vmul.f32 %v1349_v0, %v3303_v35  ;;  %v1369_v13 = vmul.f32 %v1349_v0, %v3308_v36  ;;  %v1371_v26 = vmul.f32 %v1349_v0, %v3313_v37 }
 0xcb2   :  { %v1186_v15 = vadd.f32 %v2546_v44, %v1107_v57  ;;  %v2170_v57 = vld [vmem:[%s3753_s6 + $0x38] sm:$0xff] }
 0xcb3   :  { %v2902_v21 = vpack.c.bf16 %v1366_v4, %v1365_v7  ;;  %v2906_v22 = vpack.c.bf16 %v1368_v18, %v1367_v27  ;;  %v2910_v24 = vpack.c.bf16 %v1370_v5, %v1369_v13  ;;  %v2914_v25 = vpack.c.bf16 %v1372_v6, %v1371_v26  ;;  %v2173_v5 = vld [vmem:[%s3754_s7 + $0x20] sm:$0xff]  ;;  %v2174_v6 = vld [vmem:[%s3754_s7 + $0x28] sm:$0xff]  ;;  %v2175_v7 = vld [vmem:[%s3754_s7 + $0x30] sm:$0xff] }
 0xcb4   :  { %v2922_v44 = vpack.c.bf16 %v2170_v57, %v2169_v40  ;;  %v2926_v27 = vpack.c.bf16 %v2174_v6, %v2173_v5  ;;  %v2176_v13 = vld [vmem:[%s3754_s7 + $0x38] sm:$0xff] }
 0xcb5   :  { %2903 = vmatprep.subr.bf16.mxu1 %v2902_v21  ;;  %v2930_v26 = vpack.c.bf16 %v2176_v13, %v2175_v7  ;;  %v1996_v7 = vld [vmem:[%s3757_s10] sm:$0xff] }
 0xcb6   :  { %2873 = vmatpush3.bf16.xpose.msk.msra.mxu0 %vm3337_vm4, %v2868_v56 }
 0xcb7   :  { %2876 = vmatprep.subr.msk.bf16.mxu0 %vm3337_vm4, %v2874_v58 }
 0xcbe   :  { %2879 = vmatpush3.bf16.xpose.msk.msra.mxu0 %vm3337_vm4, %v2874_v58 }
 0xcbf   :  { %2882 = vmatprep.subr.msk.bf16.mxu0 %vm3337_vm4, %v2880_v60 }
 0xcc6   :  { %2885 = vmatpush3.bf16.xpose.msk.msra.mxu0 %vm3337_vm4, %v2880_v60 }
 0xccd   :  { %2586 = vmatmul.mubr.msk.f32.vlgmr.msra.gmra.mrb[14].mxu0 %vm178_vm3, %v1186_v15  ;;  %v2182_v15 = vld [vmem:[%s3755_s8 + $0x98] sm:$0xff] }
 0xda0   :  { %v2587_v23 = vpop.f32.mrb[14].mxu0 }
 0xda1   :  { %v1475_v28 = vadd.f32 %v2587_v23, %v3366_v11  ;;  %v1469_v29 = vpop.f32.mrb[15].mxu0  ;;  %v2168_v11 = vld [vmem:[%s3753_s6 + $0x28] sm:$0xff] }
 0xda2   :  { %v1470_v30 = vadd.f32 %v1469_v29, %v3361_v8  ;;  %v2167_v8 = vld [vmem:[%s3753_s6 + $0x20] sm:$0xff]  ;;  %v2184_v29 = vld [vmem:[%s3755_s8 + $0xa8] sm:$0xff] }
 0xda3   :  { %v1481_v35 = vsel %vm77_vm0, %v1475_v28, -inf  ;;  %v2918_v42 = vpack.c.bf16 %v2168_v11, %v2167_v8  ;;  %v2192_v8 = vld [vmem:[%s3755_s8 + $0xe8] sm:$0xff] }
 0xda4   :  { %1482 = vmax.xlane.f32.xlu0 %v1481_v35  ;;  %v1478_v36 = vsel %vm77_vm0, %v1470_v30, -inf  ;;  %v2185_v35 = vld [vmem:[%s3755_s8 + $0xb0] sm:$0xff] }
 0xda5   :  { %1479 = vmax.xlane.f32.xlu1 %v1478_v36  ;;  %2919 = vmatprep.subr.bf16.mxu0 %v2918_v42  ;;  %v2186_v36 = vld [vmem:[%s3755_s8 + $0xb8] sm:$0xff] }
 0xda6   :  { %2921 = vmatpush3.bf16.msra.mxu0 %v2918_v42 }
 0xda7   :  { %2923 = vmatprep.subr.bf16.mxu0 %v2922_v44 }
 0xdaa   :  { %2925 = vmatpush3.bf16.msra.mxu0 %v2922_v44 }
 0xe31   :  { %v1483_v37 = vpop.xlane.xlu0 %1482 }
 0xe32   :  { %v1485_v14 = vsub.f32 %v1475_v28, %v1483_v37  ;;  %v1480_v31 = vpop.xlane.xlu1 %1479  ;;  %v2183_v28 = vld [vmem:[%s3755_s8 + $0xa0] sm:$0xff]  ;;  %v2946_v37 = vpack.c.bf16 %v2186_v36, %v2185_v35 }
 0xe33   :  { %v1484_v2 = vsub.f32 %v1470_v30, %v1480_v31  ;;  %v2942_v30 = vpack.c.bf16 %v2184_v29, %v2183_v28  ;;  %v2188_v31 = vld [vmem:[%s3755_s8 + $0xc8] sm:$0xff] }
 0xe34   :  { %v1488_v32 = vmul.f32 1.442695, %v1485_v14  ;;  %v2187_v14 = vld [vmem:[%s3755_s8 + $0xc0] sm:$0xff] }
 0xe35   :  { %v1486_v33 = vmul.f32 1.442695, %v1484_v2  ;;  %v2950_v2 = vpack.c.bf16 %v2188_v31, %v2187_v14  ;;  %v2195_v14 = vld [vmem:[%s3758_s11] ss:$0 sm:$0xff] }
 0xe37   :  { %3000 = vpow2.f32 %v1486_v33  ;;  %v2190_v33 = vld [vmem:[%s3755_s8 + $0xd8] sm:$0xff] }
 0xe38   :  { %3002 = vpow2.f32 %v1488_v32  ;;  %v2189_v32 = vld [vmem:[%s3755_s8 + $0xd0] sm:$0xff] }
 0xe41   :  { %v3001_v38 = vpop.eup %3000 }
 0xe42   :  { %v3003_v39 = vpop.eup %3002  ;;  %2604 = vmatprep.mubr.msk.f32.mxu1 %vm77_vm0, %v3001_v38 }
 0xe43   :  { %2605 = vmatmul.mubr.msk.f32.vlgmr.msra.gmra.mrb[12].mxu1 %vm77_vm0, %v3003_v39 }
 0xe44   :  { %2905 = vmatpush3.bf16.msra.mxu1 %v2902_v21  ;;  %v2179_v21 = vld [vmem:[%s3755_s8 + $0x80] sm:$0xff] }
 0xe45   :  { %2907 = vmatprep.subr.bf16.mxu1 %v2906_v22 }
 0xe48   :  { %2909 = vmatpush3.bf16.msra.mxu1 %v2906_v22  ;;  %v2180_v22 = vld [vmem:[%s3755_s8 + $0x88] sm:$0xff] }
 0xe49   :  { %2911 = vmatprep.subr.bf16.mxu1 %v2910_v24 }
 0xe4c   :  { %2913 = vmatpush3.bf16.msra.mxu1 %v2910_v24  ;;  %v2181_v24 = vld [vmem:[%s3755_s8 + $0x90] sm:$0xff] }
 0xe4d   :  { %2915 = vmatprep.subr.bf16.mxu1 %v2914_v25  ;;  %v2938_v23 = vpack.c.bf16 %v2182_v15, %v2181_v24 }
 0xe50   :  { %2917 = vmatpush3.bf16.msra.mxu1 %v2914_v25  ;;  %v2934_v25 = vpack.c.bf16 %v2180_v22, %v2179_v21  ;;  %v1999_v21 = vld [vmem:[%s3757_s10 + $0x18] sm:$0xff] }
 0xe51   :  { %2927 = vmatprep.subr.bf16.mxu1 %v2926_v27 }
 0xe52   :  { %2935 = vmatprep.subr.bf16.mxu0 %v2934_v25 }
 0xf16   :  { %v2606_v9 = vpop.f32.mrb[12].mxu1 }
 0xf17   :  { %v1572_v12 = vmax.f32 %v2606_v9, 1e-30  ;;  %v1562_v16 = vpop.f32.mrb[13].mxu1 }
 0xf18   :  { %v1571_v47 = vmax.f32 %v1562_v16, 1e-30 }
 0xf19   :  { %3004 = vrcp.f32 %v1572_v12 }
 0xf1a   :  { %3006 = vrcp.f32 %v1571_v47 }
 0xf23   :  { %v3005_v19 = vpop.eup %3004 }
 0xf24   :  { %v3007_v48 = vpop.eup %3006  ;;  %v1576_v3 = vmul.f32 %v3005_v19, %v3003_v39  ;;  %v2191_v39 = vld [vmem:[%s3755_s8 + $0xe0] sm:$0xff] }
 0xf25   :  { %v1575_v49 = vmul.f32 %v3007_v48, %v3001_v38  ;;  %v2954_v38 = vpack.c.bf16 %v2190_v33, %v2189_v32  ;;  %v2958_v11 = vpack.c.bf16 %v2192_v8, %v2191_v39 }
 0xf27   :  { %2623 = vmatprep.mubr.msk.f32.mxu1 %vm77_vm0, %v1575_v49  ;;  %v2193_v49 = vld [vmem:[%s3755_s8 + $0xf0] sm:$0xff] }
 0xf28   :  { %2624 = vmatmul.mubr.msk.f32.vlgmr.msra.gmra.mrb[14].mxu1 %vm77_vm0, %v1576_v3  ;;  %v2194_v3 = vld [vmem:[%s3755_s8 + $0xf8] sm:$0xff] }
 0xf29   :  { %2929 = vmatpush3.bf16.msra.mxu1 %v2926_v27  ;;  %v1997_v27 = vld [vmem:[%s3757_s10 + $0x8] sm:$0xff] }
 0xf2a   :  { %2931 = vmatprep.subr.bf16.mxu1 %v2930_v26  ;;  %v2966_v13 = vpack.c.bf16 %v1997_v27, %v1996_v7 }
 0xf2d   :  { %2933 = vmatpush3.bf16.msra.mxu1 %v2930_v26  ;;  %v1998_v26 = vld [vmem:[%s3757_s10 + $0x10] sm:$0xff] }
 0xf2e   :  { %2967 = vmatprep.subr.bf16.mxu1 %v2966_v13  ;;  %v2970_v22 = vpack.c.bf16 %v1999_v21, %v1998_v26 }
 0xffb   :  { %v2625_v1 = vpop.f32.mrb[14].mxu1 }
 0xffc   :  { %v1649_v50 = vpop.f32.mrb[15].mxu1 }
 0xffd   :  { %2634 = vmatprep.mubr.msk.f32.mxu0 %vm178_vm3, %v1649_v50  ;;  %v1786_v50 = vrot.slane %v3555_v43, %v887_v10 }
 0xffe   :  { %2635 = vmatmul.mubr.msk.f32.vlgmr.msra.gmra.mrb[16].mxu0 %vm178_vm3, %v2625_v1  ;;  %v2962_v1 = vpack.c.bf16 %v2194_v3, %v2193_v49 }
 0xfff   :  { %2937 = vmatpush3.bf16.msra.mxu0 %v2934_v25 }
0x1000   :  { %2939 = vmatprep.subr.bf16.mxu0 %v2938_v23 }
0x1003   :  { %2941 = vmatpush3.bf16.msra.mxu0 %v2938_v23 }
0x1004   :  { %2943 = vmatprep.subr.bf16.mxu0 %v2942_v30 }
0x1007   :  { %2945 = vmatpush3.bf16.msra.mxu0 %v2942_v30 }
0x1008   :  { %2947 = vmatprep.subr.bf16.mxu0 %v2946_v37 }
0x100b   :  { %2949 = vmatpush3.bf16.msra.mxu0 %v2946_v37 }
0x100c   :  { %2951 = vmatprep.subr.bf16.mxu0 %v2950_v2 }
0x100f   :  { %2953 = vmatpush3.bf16.msra.mxu0 %v2950_v2 }
0x1010   :  { %2955 = vmatprep.subr.bf16.mxu0 %v2954_v38 }
0x1013   :  { %2957 = vmatpush3.bf16.msra.mxu0 %v2954_v38 }
0x1014   :  { %2959 = vmatprep.subr.bf16.mxu0 %v2958_v11 }
0x1017   :  { %2961 = vmatpush3.bf16.msra.mxu0 %v2958_v11 }
0x1018   :  { %2963 = vmatprep.subr.bf16.mxu0 %v2962_v1 }
0x101b   :  { %2965 = vmatpush3.bf16.msra.mxu0 %v2962_v1 }
0x10d1   :  { %v2636_v51 = vpop.f32.mrb[16].mxu0 }
0x10d2   :  { %v1745_v52 = vadd.f32 %v2636_v51, %v3498_v45  ;;  %v1735_v53 = vpop.f32.mrb[17].mxu0 }
0x10d3   :  { %v1744_v34 = vadd.f32 %v1735_v53, %v3500_v46 }
0x10d4   :  { %v3627_v54 = vadd.f32 %v1749_v20, %v1745_v52 }
0x10d5   :  { %v3629_v55 = vadd.f32 %v1749_v20, %v1744_v34 }
0x10d6   :  { %v1755_v56 = vsel %vm178_vm3, %v3627_v54, 0.0 }
0x10d7   :  { %1756 = vadd.xlane.f32.xlu0 %v1755_v56  ;;  %v1752_v58 = vsel %vm178_vm3, %v3629_v55, 0.0 }
0x10d8   :  { %1753 = vadd.xlane.f32.xlu1 %v1752_v58  ;;  %v1967_v58 = vrot.slane %v3555_v43, %v1067_v41 }
0x1164   :  { %v1757_v60 = vpop.xlane.xlu0 %1756 }
0x1165   :  { %v1759_v59 = vmul.f32 0.03125, %v1757_v60  ;;  %v1754_v61 = vpop.xlane.xlu1 %1753 }
0x1166   :  { %v1758_v62 = vmul.f32 0.03125, %v1754_v61 }
0x1167   :  { %v3636_v45 = vsub.f32 %v3627_v54, %v1759_v59 }
0x1168   :  { %v1760_v46 = vsub.f32 %v3629_v55, %v1758_v62 }
0x1169   :  { %v1763_v63 = vmul.f32 %v3636_v45, %v3636_v45 }
0x116a   :  { %v1762_v0 = vmul.f32 %v1760_v46, %v1760_v46 }
0x116b   :  { %v1767_v4 = vsel %vm178_vm3, %v1763_v63, 0.0 }
0x116c   :  { %1768 = vadd.xlane.f32.xlu0 %v1767_v4  ;;  %v1764_v18 = vsel %vm178_vm3, %v1762_v0, 0.0 }
0x116d   :  { %1765 = vadd.xlane.f32.xlu1 %v1764_v18 }
0x11f9   :  { %v1769_v40 = vpop.xlane.xlu0 %1768 }
0x11fa   :  { %v1771_v42 = vmul.f32 0.03125, %v1769_v40  ;;  %v1766_v57 = vpop.xlane.xlu1 %1765 }
0x11fb   :  { %v1770_v44 = vmul.f32 0.03125, %v1766_v57 }
0x11fc   :  { %v1773_v9 = vadd.f32 1e-05, %v1771_v42 }
0x11fd   :  { %v1772_v12 = vadd.f32 1e-05, %v1770_v44 }
0x11fe   :  { %3008 = vrsqrt.f32 %v1773_v9 }
0x11ff   :  { %3010 = vrsqrt.f32 %v1772_v12 }
0x1208   :  { %v3009_v16 = vpop.eup %3008 }
0x1209   :  { %v3011_v47 = vpop.eup %3010  ;;  %v1777_v48 = vmul.f32 %v3009_v16, %v3636_v45 }
0x120a   :  { %v1776_v19 = vmul.f32 %v3011_v47, %v1760_v46 }
0x120c   :  { %2645 = vmatprep.mubr.msk.f32.mxu1 %vm178_vm3, %v1776_v19 }
0x120d   :  { %2646 = vmatmul.mubr.msk.f32.vlgmr.msra.gmra.mrb[16].mxu1 %vm178_vm3, %v1777_v48 }
0x120e   :  { %2969 = vmatpush3.bf16.msra.mxu1 %v2966_v13 }
0x120f   :  { %2971 = vmatprep.subr.bf16.mxu1 %v2970_v22 }
0x1212   :  { %2973 = vmatpush3.bf16.msra.mxu1 %v2970_v22 }
0x12e0   :  { %v2647_v20 = vpop.f32.mrb[16].mxu1 }
0x12e1   :  { %v1865_v51 = vadd.f32 %v2647_v20, %v1786_v50  ;;  %v1859_v52 = vpop.f32.mrb[17].mxu1 }
0x12e2   :  { %v1860_v53 = vadd.f32 %v1859_v52, %v1786_v50 }
0x12e3   :  { %v1869_v56 = vmax.f32 %v1865_v51, 0.0 }
0x12e4   :  { %v1868_v34 = vmax.f32 %v1860_v53, 0.0 }
0x12e6   :  { %2680 = vmatprep.mubr.f32.mxu0 %v1868_v34 }
0x12e7   :  { %2681 = vmatmul.mubr.f32.vlgmr.msra.gmra.mrb[18].mxu0 %v1869_v56 }
0x13ba   :  { %v2682_v60 = vpop.f32.mrb[18].mxu0 }
0x13bb   :  { %v1963_v59 = vadd.f32 %v2682_v60, %v3627_v54  ;;  %v1953_v61 = vpop.f32.mrb[19].mxu0 }
0x13bc   :  { %v1962_v62 = vadd.f32 %v1953_v61, %v3629_v55 }
0x13bd   :  { %v1969_v45 = vadd.f32 %v1967_v58, %v1963_v59 }
0x13be   :  { %v1968_v10 = vadd.f32 %v1967_v58, %v1962_v62 }
0x13bf   :  { %v1973_v46 = vsel %vm178_vm3, %v1969_v45, 0.0 }
0x13c0   :  { %1974 = vadd.xlane.f32.xlu0 %v1973_v46  ;;  %v1970_v63 = vsel %vm178_vm3, %v1968_v10, 0.0 }
0x13c1   :  { %1971 = vadd.xlane.f32.xlu1 %v1970_v63 }
0x144d   :  { %v1975_v0 = vpop.xlane.xlu0 %1974 }
0x144e   :  { %v1977_v4 = vmul.f32 0.03125, %v1975_v0  ;;  %v1972_v18 = vpop.xlane.xlu1 %1971 }
0x144f   :  { %v1976_v17 = vmul.f32 0.03125, %v1972_v18 }
0x1450   :  { %v1979_v5 = vsub.f32 %v1969_v45, %v1977_v4 }
0x1451   :  { %v1978_v41 = vsub.f32 %v1968_v10, %v1976_v17 }
0x1452   :  { %v1981_v43 = vmul.f32 %v1979_v5, %v1979_v5 }
0x1453   :  { %v1980_v6 = vmul.f32 %v1978_v41, %v1978_v41 }
0x1454   :  { %v1985_v54 = vsel %vm178_vm3, %v1981_v43, 0.0 }
0x1455   :  { %1986 = vadd.xlane.f32.xlu0 %v1985_v54  ;;  %v1982_v55 = vsel %vm178_vm3, %v1980_v6, 0.0 }
0x1456   :  { %1983 = vadd.xlane.f32.xlu1 %v1982_v55 }
0x14e2   :  { %v1987_v24 = vpop.xlane.xlu0 %1986 }
0x14e3   :  { %v1989_v25 = vmul.f32 0.03125, %v1987_v24  ;;  %v1984_v15 = vpop.xlane.xlu1 %1983 }
0x14e4   :  { %v1988_v23 = vmul.f32 0.03125, %v1984_v15 }
0x14e5   :  { %v1991_v28 = vadd.f32 1e-05, %v1989_v25 }
0x14e6   :  { %v1990_v29 = vadd.f32 1e-05, %v1988_v23 }
0x14e7   :  { %3012 = vrsqrt.f32 %v1991_v28 }
0x14e8   :  { %3014 = vrsqrt.f32 %v1990_v29 }
0x14f1   :  { %v3013_v30 = vpop.eup %3012 }
0x14f2   :  { %v3015_v35 = vpop.eup %3014  ;;  %v1995_v37 = vmul.f32 %v3013_v30, %v1979_v5 }
0x14f3   :  { %v1994_v36 = vmul.f32 %v3015_v35, %v1978_v41 }
0x14f5   :  { %2691 = vmatprep.mubr.msk.f32.mxu1 %vm178_vm3, %v1994_v36 }
0x14f6   :  { %2692 = vmatmul.mubr.msk.f32.vlgmr.msra.gmra.mrb[18].mxu1 %vm178_vm3, %v1995_v37 }
0x15c9   :  { %v2693_v31 = vpop.f32.mrb[18].mxu1 }
0x15ca   :  { %v2085_v2 = vadd.f32 %v2693_v31, %v2195_v14  ;;  %v2079_v32 = vpop.f32.mrb[19].mxu1 }
0x15cb   :  { %v2080_v33 = vadd.f32 %v2195_v14, %v2079_v32 }
0x15cc   :  { %2089 = vst [vmem:[#allocation2 + $0x8] sm:$0xff] %v2085_v2 }
0x15cd   :  { %2088 = vst [vmem:[#allocation2] sm:$0xff] %v2080_v33 }
0x15ce   :  { %3027 = shalt.err (!%p3024_p4)
}
0x15cf   :  { %s3028_s11 = scalar_lea.hbm %s3762_s15, 256 }
0x15d0   :  { %p3029_p5 = scmp.ne.s32.totalorder %s3762_s15, %s3028_s11  ;;  %p3032_p6 = scmp.lt.u32.totalorder %s3028_s11, %s3762_s15 }
0x15d2   :  { %p3034_p7 = pnand %p3032_p6, %p3029_p5 }
0x15d4   :  { %3037 = shalt.err (!%p3034_p7)
}
0x15d5   :  { %s3043_s13 = smov 128   ;;  %s3044_s3 = smov 8  }
0x15d6   :  { %2101 = dma.vmem_to_hbm [thread:$0]  %s2096_s1, 256, %s3762_s15, [#allocation3], %s3043_s13, %s3043_s13, %s3044_s3  }
0x15d7   :  { %3038 = dma.done.wait [#allocation3], 256  }
0x15d8   :  { %3039 = vsyncadd [#allocation3], 4294967040 }
0x15d9   :  { %2105 = vsyncpa [#allocation3], 1 }

</bundles_post_ra>
